<compile_context>
chip_gen: v7x
topology: tpu7x:2x2x1
jax: 0.10.0
libtpu: 0.0.40
codegen_flags: <defaults>
</compile_context>

<pallas_src>
import functools

import jax
import jax.numpy as jnp
from jax.experimental import pallas as pl
from jax.experimental.pallas import tpu as pltpu


def _round_up(x, m):
    return ((x + m - 1) // m) * m


# ------------------------------ fused kernel ---------------------------------
def _fused_forward_kernel(adj_ref, x_ref, w1_ref, b1_ref, w2_ref, b2_ref, mu0_ref,
                          mu_out_ref, r_out_ref, embeds_out_ref, dist_out_ref,
                          *, cluster_temp, k_true, num_iter):
    adj = adj_ref[...]                                                    # (N, N)

    # ---- GCN layer 1: relu(adj @ (x @ W1) + b1) ----
    s1 = jnp.dot(x_ref[...], w1_ref[...], preferred_element_type=jnp.float32)
    h = jnp.dot(adj, s1, preferred_element_type=jnp.float32) + b1_ref[...]
    h = jnp.maximum(h, 0.0)
    # TODO(synk): F.dropout(p=0.2) treated as identity (eval mode); training-mode
    # dropout would use pltpu.prng_seed / pltpu.prng_random_bits.

    # ---- GCN layer 2: adj @ (h @ W2) + b2 ----
    s2 = jnp.dot(h, w2_ref[...], preferred_element_type=jnp.float32)
    embeds = jnp.dot(adj, s2, preferred_element_type=jnp.float32) + b2_ref[...]
    embeds_out_ref[...] = embeds                                          # (N, d)

    # ---- normalize once onto the unit sphere (shared by every cluster step) ----
    sumsq = jnp.sum(embeds * embeds, axis=1, keepdims=True)
    data = embeds * jax.lax.rsqrt(sumsq + 1e-12)                          # (N, d)

    n, k_pad = r_out_ref.shape
    col = jax.lax.broadcasted_iota(jnp.int32, (n, k_pad), 1)
    valid = col < k_true                                                  # mask padded clusters
    neg_inf = jnp.float32(-1e30)
    temp = jnp.float32(cluster_temp)

    def soft_assign(mu):
        # dist = data @ mu.T without materializing the transpose (contract feature dim).
        dist = jax.lax.dot_general(data, mu, (((1,), (1,)), ((), ())),
                                   preferred_element_type=jnp.float32)    # (N, K_pad)
        r = jax.nn.softmax(jnp.where(valid, temp * dist, neg_inf), axis=1)
        return dist, r

    def update_mu(mu):
        _, r = soft_assign(mu)
        cluster_r = jnp.sum(r, axis=0, keepdims=True)                     # (1, K_pad)
        inv_r = pl.reciprocal(cluster_r + 1e-12, approx=True)             # EUP slot
        # new_mu[k] = sum_n (r[n,k] / cluster_r[k]) * data[n]  ==  diag(1/r_sum) @ (r.T @ data)
        return jax.lax.dot_general(r * inv_r, data, (((0,), (0,)), ((), ())),
                                   preferred_element_type=jnp.float32)    # (K_pad, d)

    mu = mu0_ref[...]
    # Warmup: cluster(embeds, K, num_iter, init=self.init) — only mu_init is consumed,
    # so the discarded dist/r recompute of that call is skipped.
    for _ in range(num_iter):
        mu = update_mu(mu)
    # Final: cluster(embeds, K, 1, init=mu_init) — one more mu update, then dist/r.
    mu = update_mu(mu)
    dist, r = soft_assign(mu)

    mu_out_ref[...] = mu
    r_out_ref[...] = r
    dist_out_ref[...] = dist


# ------------------------------ full forward ---------------------------------
def gcn_clusternet_forward(params, x, adj, cluster_temp, num_iter=1):
    n, nfeat = x.shape
    nhid = params["w1"].shape[1]
    nout = params["w2"].shape[1]
    k = params["init"].shape[0]
    k_pad = _round_up(max(k, 8), 8)

    # zero-pad the cluster-center init to K_pad rows (padded rows stay exactly zero).
    mu0 = jnp.zeros((k_pad, nout), jnp.float32).at[:k, :].set(
        params["init"].astype(jnp.float32))

    kernel = functools.partial(
        _fused_forward_kernel,
        cluster_temp=float(cluster_temp),
        k_true=int(k),
        num_iter=int(num_iter),
    )

    # advisory cost estimate so XLA schedules the custom call sensibly
    flops = 2 * (
        n * nfeat * nhid            # x @ W1
        + n * n * nhid              # adj @ support1
        + n * nhid * nout           # h @ W2
        + n * n * nout              # adj @ support2
        + (num_iter + 2) * n * nout * k_pad   # dist matmuls
        + (num_iter + 1) * n * k_pad * nout   # r.T @ data matmuls
    )
    transcendentals = (num_iter + 2) * n * k_pad + n + (num_iter + 1) * k_pad
    bytes_accessed = 4 * (adj.size + x.size
                          + params["w1"].size + params["b1"].size
                          + params["w2"].size + params["b2"].size
                          + mu0.size
                          + k_pad * nout + 2 * n * k_pad + n * nout)

    vmem = pl.BlockSpec(memory_space=pltpu.MemorySpace.VMEM)
    mu_p, r_p, embeds, dist_p = pl.pallas_call(
        kernel,
        out_shape=(
            jax.ShapeDtypeStruct((k_pad, nout), jnp.float32),
            jax.ShapeDtypeStruct((n, k_pad), jnp.float32),
            jax.ShapeDtypeStruct((n, nout), jnp.float32),
            jax.ShapeDtypeStruct((n, k_pad), jnp.float32),
        ),
        in_specs=[vmem, vmem, vmem, vmem, vmem, vmem, vmem],
        out_specs=(vmem, vmem, vmem, vmem),
        cost_estimate=pl.CostEstimate(
            flops=int(flops),
            transcendentals=int(transcendentals),
            bytes_accessed=int(bytes_accessed),
        ),
    )(adj, x, params["w1"], params["b1"], params["w2"], params["b2"], mu0)

    # slice the K padding back off
    return mu_p[:k, :], r_p[:, :k], embeds, dist_p[:, :k]


# ---------------------------------- main --------------------------------------
if __name__ == "__main__":
    # small shapes consistent with the module (nfeat/nhid/nout dims, K clusters)
    N, NFEAT, NHID, NOUT, K = 64, 16, 32, 32, 3
    CLUSTER_TEMP = 50.0

    key = jax.random.PRNGKey(0)
    k_x, k_a, k_w1, k_b1, k_w2, k_b2, k_init, k_dm = jax.random.split(key, 8)

    # node features
    x = jax.random.normal(k_x, (N, NFEAT), dtype=jnp.float32)

    # dense symmetric normalized adjacency  D^-1/2 (A + I) D^-1/2
    a = (jax.random.uniform(k_a, (N, N)) < 0.1).astype(jnp.float32)
    a = jnp.maximum(a, a.T) + jnp.eye(N, dtype=jnp.float32)
    dinv = 1.0 / jnp.sqrt(jnp.sum(a, axis=1))
    adj = a * dinv[:, None] * dinv[None, :]

    # deterministic parameter init (Kipf GraphConvolution: U(-1/sqrt(out), 1/sqrt(out)))
    def _uni(kk, shape, bound):
        return jax.random.uniform(kk, shape, jnp.float32, -bound, bound)

    params = {
        "w1": _uni(k_w1, (NFEAT, NHID), 1.0 / (NHID ** 0.5)),
        "b1": _uni(k_b1, (1, NHID), 1.0 / (NHID ** 0.5)),
        "w2": _uni(k_w2, (NHID, NOUT), 1.0 / (NOUT ** 0.5)),
        "b2": _uni(k_b2, (1, NOUT), 1.0 / (NOUT ** 0.5)),
        "init": jax.random.uniform(k_init, (K, NOUT), jnp.float32),   # torch.rand(K, nout)
        "distmult": jax.random.uniform(k_dm, (NOUT,), jnp.float32),   # unused in forward
    }

    mu, r, embeds, dist = gcn_clusternet_forward(params, x, adj, CLUSTER_TEMP, num_iter=1)
    jax.block_until_ready((mu, r, embeds, dist))

    assert mu.shape == (K, NOUT)
    assert r.shape == (N, K)
    assert embeds.shape == (N, NOUT)
    assert dist.shape == (N, K)
    assert bool(jnp.all(jnp.isfinite(mu)))
    assert bool(jnp.all(jnp.isfinite(r)))
    print("KERNEL_OK")
</pallas_src>

<mosaic_0001>
module attributes {stable_mosaic.version = 11 : i64} {
  func.func @_fused_forward_kernel(%arg0: memref<64x64xf32, #tpu.memory_space<vmem>>, %arg1: memref<64x16xf32, #tpu.memory_space<vmem>>, %arg2: memref<16x32xf32, #tpu.memory_space<vmem>>, %arg3: memref<1x32xf32, #tpu.memory_space<vmem>>, %arg4: memref<32x32xf32, #tpu.memory_space<vmem>>, %arg5: memref<1x32xf32, #tpu.memory_space<vmem>>, %arg6: memref<8x32xf32, #tpu.memory_space<vmem>>, %arg7: memref<8x32xf32, #tpu.memory_space<vmem>>, %arg8: memref<64x8xf32, #tpu.memory_space<vmem>>, %arg9: memref<64x32xf32, #tpu.memory_space<vmem>>, %arg10: memref<64x8xf32, #tpu.memory_space<vmem>>) attributes {dimension_semantics = [], scalar_prefetch = 0 : i64, scratch_operands = 0 : i64, tpu.core_type = #tpu.core_type<tc>} {
    %c0 = arith.constant 0 : index
    %c0_0 = arith.constant 0 : index
    %0 = vector.load %arg0[%c0, %c0_0] : memref<64x64xf32, #tpu.memory_space<vmem>>, vector<64x64xf32>
    %c0_1 = arith.constant 0 : index
    %c0_2 = arith.constant 0 : index
    %1 = vector.load %arg1[%c0_1, %c0_2] : memref<64x16xf32, #tpu.memory_space<vmem>>, vector<64x16xf32>
    %c0_3 = arith.constant 0 : index
    %c0_4 = arith.constant 0 : index
    %2 = vector.load %arg2[%c0_3, %c0_4] : memref<16x32xf32, #tpu.memory_space<vmem>>, vector<16x32xf32>
    %cst = arith.constant dense<0.000000e+00> : vector<64x32xf32>
    %3 = tpu.matmul %1, %2, %cst {dimension_numbers = #tpu.dot_dimension_numbers<[1], [0], [0], [1], [0, 0, 1, 1], [], []>} : vector<64x16xf32>, vector<16x32xf32>, vector<64x32xf32> -> vector<64x32xf32>
    %cst_5 = arith.constant dense<0.000000e+00> : vector<64x32xf32>
    %4 = tpu.matmul %0, %3, %cst_5 {dimension_numbers = #tpu.dot_dimension_numbers<[1], [0], [0], [1], [0, 0, 1, 1], [], []>} : vector<64x64xf32>, vector<64x32xf32>, vector<64x32xf32> -> vector<64x32xf32>
    %c0_6 = arith.constant 0 : index
    %c0_7 = arith.constant 0 : index
    %5 = vector.load %arg3[%c0_6, %c0_7] : memref<1x32xf32, #tpu.memory_space<vmem>>, vector<1x32xf32>
    %6 = vector.broadcast %5 : vector<1x32xf32> to vector<64x32xf32>
    %7 = arith.addf %4, %6 : vector<64x32xf32>
    %cst_8 = arith.constant 0.000000e+00 : f32
    %8 = vector.broadcast %cst_8 : f32 to vector<64x32xf32>
    %9 = arith.maximumf %7, %8 : vector<64x32xf32>
    %c0_9 = arith.constant 0 : index
    %c0_10 = arith.constant 0 : index
    %10 = vector.load %arg4[%c0_9, %c0_10] : memref<32x32xf32, #tpu.memory_space<vmem>>, vector<32x32xf32>
    %cst_11 = arith.constant dense<0.000000e+00> : vector<64x32xf32>
    %11 = tpu.matmul %9, %10, %cst_11 {dimension_numbers = #tpu.dot_dimension_numbers<[1], [0], [0], [1], [0, 0, 1, 1], [], []>} : vector<64x32xf32>, vector<32x32xf32>, vector<64x32xf32> -> vector<64x32xf32>
    %cst_12 = arith.constant dense<0.000000e+00> : vector<64x32xf32>
    %12 = tpu.matmul %0, %11, %cst_12 {dimension_numbers = #tpu.dot_dimension_numbers<[1], [0], [0], [1], [0, 0, 1, 1], [], []>} : vector<64x64xf32>, vector<64x32xf32>, vector<64x32xf32> -> vector<64x32xf32>
    %c0_13 = arith.constant 0 : index
    %c0_14 = arith.constant 0 : index
    %13 = vector.load %arg5[%c0_13, %c0_14] : memref<1x32xf32, #tpu.memory_space<vmem>>, vector<1x32xf32>
    %14 = vector.broadcast %13 : vector<1x32xf32> to vector<64x32xf32>
    %15 = arith.addf %12, %14 : vector<64x32xf32>
    %c0_15 = arith.constant 0 : index
    %c0_16 = arith.constant 0 : index
    %16 = vector.load %arg9[%c0_15, %c0_16] : memref<64x32xf32, #tpu.memory_space<vmem>>, vector<64x32xf32>
    tpu.vector_store %arg9[%c0_15, %c0_16], %15 {strides = array<i32>} : memref<64x32xf32, #tpu.memory_space<vmem>>, vector<64x32xf32>,
    %17 = arith.mulf %15, %15 : vector<64x32xf32>
    %cst_17 = arith.constant dense<0.000000e+00> : vector<64xf32>
    %18 = vector.multi_reduction <add>, %17, %cst_17 [1] : vector<64x32xf32> to vector<64xf32>
    %19 = vector.shape_cast %18 : vector<64xf32> to vector<64x1xf32>
    %cst_18 = arith.constant 9.99999996E-13 : f32
    %20 = vector.broadcast %cst_18 : f32 to vector<64x1xf32>
    %21 = arith.addf %19, %20 : vector<64x1xf32>
    %22 = math.rsqrt %21 : vector<64x1xf32>
    %23 = vector.broadcast %22 : vector<64x1xf32> to vector<64x32xf32>
    %24 = arith.mulf %15, %23 : vector<64x32xf32>
    %25 = tpu.iota {dimensions = array<i32: 1>} : vector<64x8xi32>
    %c3_i32 = arith.constant 3 : i32
    %26 = vector.broadcast %c3_i32 : i32 to vector<64x8xi32>
    %27 = arith.cmpi slt, %25, %26 : vector<64x8xi32>
    %c0_19 = arith.constant 0 : index
    %c0_20 = arith.constant 0 : index
    %28 = vector.load %arg6[%c0_19, %c0_20] : memref<8x32xf32, #tpu.memory_space<vmem>>, vector<8x32xf32>
    %cst_21 = arith.constant dense<0.000000e+00> : vector<64x8xf32>
    %29 = tpu.matmul %24, %28, %cst_21 {dimension_numbers = #tpu.dot_dimension_numbers<[1], [1], [0], [0], [0, 0, 1, 0], [], []>} : vector<64x32xf32>, vector<8x32xf32>, vector<64x8xf32> -> vector<64x8xf32>
    %cst_22 = arith.constant 5.000000e+01 : f32
    %30 = vector.broadcast %cst_22 : f32 to vector<64x8xf32>
    %31 = arith.mulf %30, %29 : vector<64x8xf32>
    %cst_23 = arith.constant -1.000000e+30 : f32
    %32 = vector.broadcast %cst_23 : f32 to vector<64x8xf32>
    %33 = arith.select %27, %31, %32 : vector<64x8xi1>, vector<64x8xf32>
    %cst_24 = arith.constant dense<0xFF800000> : vector<64xf32>
    %34 = vector.multi_reduction <maximumf>, %33, %cst_24 [1] : vector<64x8xf32> to vector<64xf32>
    %cst_25 = arith.constant 0xFF800000 : f32
    %35 = vector.broadcast %cst_25 : f32 to vector<64xf32>
    %36 = arith.maximumf %35, %34 : vector<64xf32>
    %37 = vector.shape_cast %36 : vector<64xf32> to vector<64x1xf32>
    %38 = vector.broadcast %37 : vector<64x1xf32> to vector<64x8xf32>
    %39 = arith.subf %33, %38 : vector<64x8xf32>
    %40 = math.exp %39 : vector<64x8xf32>
    %cst_26 = arith.constant dense<0.000000e+00> : vector<64xf32>
    %41 = vector.multi_reduction <add>, %40, %cst_26 [1] : vector<64x8xf32> to vector<64xf32>
    %42 = vector.shape_cast %41 : vector<64xf32> to vector<64x1xf32>
    %43 = vector.broadcast %42 : vector<64x1xf32> to vector<64x8xf32>
    %44 = arith.divf %40, %43 : vector<64x8xf32>
    %cst_27 = arith.constant dense<0.000000e+00> : vector<8xf32>
    %45 = vector.multi_reduction <add>, %44, %cst_27 [0] : vector<64x8xf32> to vector<8xf32>
    %46 = vector.shape_cast %45 : vector<8xf32> to vector<1x8xf32>
    %cst_28 = arith.constant 9.99999996E-13 : f32
    %47 = vector.broadcast %cst_28 : f32 to vector<1x8xf32>
    %48 = arith.addf %46, %47 : vector<1x8xf32>
    %49 = tpu.reciprocal %48 {approx = true} : vector<1x8xf32> -> vector<1x8xf32>
    %50 = vector.broadcast %49 : vector<1x8xf32> to vector<64x8xf32>
    %51 = arith.mulf %44, %50 : vector<64x8xf32>
    %cst_29 = arith.constant dense<0.000000e+00> : vector<8x32xf32>
    %52 = tpu.matmul %51, %24, %cst_29 {dimension_numbers = #tpu.dot_dimension_numbers<[0], [0], [1], [1], [0, 1, 1, 1], [], []>} : vector<64x8xf32>, vector<64x32xf32>, vector<8x32xf32> -> vector<8x32xf32>
    %cst_30 = arith.constant dense<0.000000e+00> : vector<64x8xf32>
    %53 = tpu.matmul %24, %52, %cst_30 {dimension_numbers = #tpu.dot_dimension_numbers<[1], [1], [0], [0], [0, 0, 1, 0], [], []>} : vector<64x32xf32>, vector<8x32xf32>, vector<64x8xf32> -> vector<64x8xf32>
    %cst_31 = arith.constant 5.000000e+01 : f32
    %54 = vector.broadcast %cst_31 : f32 to vector<64x8xf32>
    %55 = arith.mulf %54, %53 : vector<64x8xf32>
    %cst_32 = arith.constant -1.000000e+30 : f32
    %56 = vector.broadcast %cst_32 : f32 to vector<64x8xf32>
    %57 = arith.select %27, %55, %56 : vector<64x8xi1>, vector<64x8xf32>
    %cst_33 = arith.constant dense<0xFF800000> : vector<64xf32>
    %58 = vector.multi_reduction <maximumf>, %57, %cst_33 [1] : vector<64x8xf32> to vector<64xf32>
    %cst_34 = arith.constant 0xFF800000 : f32
    %59 = vector.broadcast %cst_34 : f32 to vector<64xf32>
    %60 = arith.maximumf %59, %58 : vector<64xf32>
    %61 = vector.shape_cast %60 : vector<64xf32> to vector<64x1xf32>
    %62 = vector.broadcast %61 : vector<64x1xf32> to vector<64x8xf32>
    %63 = arith.subf %57, %62 : vector<64x8xf32>
    %64 = math.exp %63 : vector<64x8xf32>
    %cst_35 = arith.constant dense<0.000000e+00> : vector<64xf32>
    %65 = vector.multi_reduction <add>, %64, %cst_35 [1] : vector<64x8xf32> to vector<64xf32>
    %66 = vector.shape_cast %65 : vector<64xf32> to vector<64x1xf32>
    %67 = vector.broadcast %66 : vector<64x1xf32> to vector<64x8xf32>
    %68 = arith.divf %64, %67 : vector<64x8xf32>
    %cst_36 = arith.constant dense<0.000000e+00> : vector<8xf32>
    %69 = vector.multi_reduction <add>, %68, %cst_36 [0] : vector<64x8xf32> to vector<8xf32>
    %70 = vector.shape_cast %69 : vector<8xf32> to vector<1x8xf32>
    %cst_37 = arith.constant 9.99999996E-13 : f32
    %71 = vector.broadcast %cst_37 : f32 to vector<1x8xf32>
    %72 = arith.addf %70, %71 : vector<1x8xf32>
    %73 = tpu.reciprocal %72 {approx = true} : vector<1x8xf32> -> vector<1x8xf32>
    %74 = vector.broadcast %73 : vector<1x8xf32> to vector<64x8xf32>
    %75 = arith.mulf %68, %74 : vector<64x8xf32>
    %cst_38 = arith.constant dense<0.000000e+00> : vector<8x32xf32>
    %76 = tpu.matmul %75, %24, %cst_38 {dimension_numbers = #tpu.dot_dimension_numbers<[0], [0], [1], [1], [0, 1, 1, 1], [], []>} : vector<64x8xf32>, vector<64x32xf32>, vector<8x32xf32> -> vector<8x32xf32>
    %cst_39 = arith.constant dense<0.000000e+00> : vector<64x8xf32>
    %77 = tpu.matmul %24, %76, %cst_39 {dimension_numbers = #tpu.dot_dimension_numbers<[1], [1], [0], [0], [0, 0, 1, 0], [], []>} : vector<64x32xf32>, vector<8x32xf32>, vector<64x8xf32> -> vector<64x8xf32>
    %cst_40 = arith.constant 5.000000e+01 : f32
    %78 = vector.broadcast %cst_40 : f32 to vector<64x8xf32>
    %79 = arith.mulf %78, %77 : vector<64x8xf32>
    %cst_41 = arith.constant -1.000000e+30 : f32
    %80 = vector.broadcast %cst_41 : f32 to vector<64x8xf32>
    %81 = arith.select %27, %79, %80 : vector<64x8xi1>, vector<64x8xf32>
    %cst_42 = arith.constant dense<0xFF800000> : vector<64xf32>
    %82 = vector.multi_reduction <maximumf>, %81, %cst_42 [1] : vector<64x8xf32> to vector<64xf32>
    %cst_43 = arith.constant 0xFF800000 : f32
    %83 = vector.broadcast %cst_43 : f32 to vector<64xf32>
    %84 = arith.maximumf %83, %82 : vector<64xf32>
    %85 = vector.shape_cast %84 : vector<64xf32> to vector<64x1xf32>
    %86 = vector.broadcast %85 : vector<64x1xf32> to vector<64x8xf32>
    %87 = arith.subf %81, %86 : vector<64x8xf32>
    %88 = math.exp %87 : vector<64x8xf32>
    %cst_44 = arith.constant dense<0.000000e+00> : vector<64xf32>
    %89 = vector.multi_reduction <add>, %88, %cst_44 [1] : vector<64x8xf32> to vector<64xf32>
    %90 = vector.shape_cast %89 : vector<64xf32> to vector<64x1xf32>
    %91 = vector.broadcast %90 : vector<64x1xf32> to vector<64x8xf32>
    %92 = arith.divf %88, %91 : vector<64x8xf32>
    %c0_45 = arith.constant 0 : index
    %c0_46 = arith.constant 0 : index
    %93 = vector.load %arg7[%c0_45, %c0_46] : memref<8x32xf32, #tpu.memory_space<vmem>>, vector<8x32xf32>
    tpu.vector_store %arg7[%c0_45, %c0_46], %76 {strides = array<i32>} : memref<8x32xf32, #tpu.memory_space<vmem>>, vector<8x32xf32>,
    %c0_47 = arith.constant 0 : index
    %c0_48 = arith.constant 0 : index
    %94 = vector.load %arg8[%c0_47, %c0_48] : memref<64x8xf32, #tpu.memory_space<vmem>>, vector<64x8xf32>
    tpu.vector_store %arg8[%c0_47, %c0_48], %92 {strides = array<i32>} : memref<64x8xf32, #tpu.memory_space<vmem>>, vector<64x8xf32>,
    %c0_49 = arith.constant 0 : index
    %c0_50 = arith.constant 0 : index
    %95 = vector.load %arg10[%c0_49, %c0_50] : memref<64x8xf32, #tpu.memory_space<vmem>>, vector<64x8xf32>
    tpu.vector_store %arg10[%c0_49, %c0_50], %77 {strides = array<i32>} : memref<64x8xf32, #tpu.memory_space<vmem>>, vector<64x8xf32>,
    return
  }
}

</mosaic_0001>

<bundles_post_ra>
// kernel: tpu_custom_call.1
= control target key start
LH: loop header
LB: loop body
LE: loop exit
PB: predicated region body
PF: predicated region fallthrough
CT: control target
= control target key end

     0   :  { %16 = vsyncpa [#allocation3], 0  ;;  %s2795_s0 = inlined_call_operand.vmem [shape: f32[64,64], index: 0, kind: input, shape index: {}]   ;;  %s2796_s1 = inlined_call_operand.vmem [shape: f32[64,16], index: 1, kind: input, shape index: {}]   ;;  %s2797_s2 = inlined_call_operand.vmem [shape: f32[16,32], index: 2, kind: input, shape index: {}]   ;;  %s2798_s3 = inlined_call_operand.vmem [shape: f32[1,32], index: 3, kind: input, shape index: {}]   ;;  %s2799_s4 = inlined_call_operand.hbm [shape: f32[32,32], index: 4, kind: input, shape index: {}]   ;;  %s2800_s5 = inlined_call_operand.vmem [shape: f32[1,32], index: 5, kind: input, shape index: {}]   ;;  %s2801_s6 = inlined_call_operand.vmem [shape: f32[8,32], index: 6, kind: input, shape index: {}]   ;;  %s2802_s7 = inlined_call_operand.hbm [shape: f32[8,32], index: 7, kind: output, shape index: {0}]   ;;  %s2803_s8 = inlined_call_operand.vmem [shape: f32[64,8], index: 8, kind: output, shape index: {1}]   ;;  %s2804_s9 = inlined_call_operand.vmem [shape: f32[64,32], index: 9, kind: output, shape index: {2}]   ;;  %s2805_s10 = inlined_call_operand.vmem [shape: f32[64,8], index: 10, kind: output, shape index: {3}]  }
   0x1   :  { %17 = vsyncpa [#allocation4], 0  ;;  %s2202_s13 = smov [#allocation2]   ;;  %s2154_s17 = scalar_lea.hbm %s2799_s4, 512 }
   0x2   :  { %s31_s14 = sshll.u32 %s2202_s13, 4  ;;  %p2155_p0 = scmp.ne.s32.totalorder %s2799_s4, %s2154_s17  ;;  %s32_s14 = int_to_ptr.vmem [resolvable:$true] %s31_s14 }
   0x3   :  { %p2158_p1 = scmp.lt.u32.totalorder %s2154_s17, %s2799_s4 }
   0x5   :  { %p2160_p2 = pnand %p2158_p1, %p2155_p0 }
   0x7   :  { %2163 = shalt.err (!%p2160_p2)
}
   0x8   :  { %s2164_s22 = scalar_lea.vmem %s32_s14, 512  ;;  %p2169_p4 = scmp.lt.s32.totalorder %s32_s14, %s32_s14 }
   0x9   :  { %p2165_p3 = scmp.ne.s32.totalorder %s32_s14, %s2164_s22  ;;  %p2170_p5 = scmp.lt.s32.totalorder %s2164_s22, %s2164_s22 }
   0xb   :  { %p2171_p6 = por %p2170_p5, %p2169_p4 }
   0xd   :  { %p2172_p7 = pnand %p2171_p6, %p2165_p3 }
   0xf   :  { %2175 = shalt.err (!%p2172_p7)
}
  0x10   :  { %s2203_s23 = smov 128   ;;  %s2204_s24 = smov 8  }
  0x11   :  { %37 = dma.hbm_to_vmem [thread:$0]  %s2799_s4, 512, %s32_s14, [#allocation3], %s2203_s23, %s2203_s23, %s2204_s24  }
  0x12   :  { %2198 = dma.done.wait [#allocation3], 512  }
  0x13   :  { %2199 = vsyncadd [#allocation3], 4294966784  ;;  %vm63_vm0 = vcmask 130048   ;;  %v61_v0 = vld [vmem:[%s2797_s2] sm:$0xff]  ;;  %v62_v1 = vld [vmem:[%s2797_s2 + $0x8] sm:$0xff]  ;;  %vm200_vm1 = vcmask 523264  }
  0x14   :  { %v53_v2 = vld [vmem:[%s2796_s1] sm:$0xff]  ;;  %v1963_v3 = vpack.c.bf16 %v62_v1, %v61_v0  ;;  %v54_v4 = vld [vmem:[%s2796_s1 + $0x8] sm:$0xff]  ;;  %v55_v5 = vld [vmem:[%s2796_s1 + $0x10] sm:$0xff]  ;;  %vm342_vm2 = vcmask 261120   ;;  %vm800_vm4 = vcmask 64512   ;;  %vm2206_vm5 = vmmov 0  }
  0x15   :  { %1795 = vmatprep.mubr.msk.f32.mxu1 %vm63_vm0, %v53_v2  ;;  %v56_v6 = vld [vmem:[%s2796_s1 + $0x18] sm:$0xff]  ;;  %v57_v7 = vld [vmem:[%s2796_s1 + $0x20] sm:$0xff]  ;;  %v58_v8 = vld [vmem:[%s2796_s1 + $0x28] sm:$0xff] }
  0x16   :  { %1964 = vmatprep.subr.bf16.mxu1 %v1963_v3  ;;  %v59_v9 = vld [vmem:[%s2796_s1 + $0x30] sm:$0xff]  ;;  %v60_v10 = vld [vmem:[%s2796_s1 + $0x38] sm:$0xff]  ;;  %v45_v11 = vld [vmem:[%s2795_s0] sm:$0xff] }
  0x17   :  { %1966 = vmatpush3.bf16.msra.mxu1 %v1963_v3  ;;  %v338_v12 = vld [vmem:[#allocation2] sm:$0xff]  ;;  %v339_v13 = vld [vmem:[#allocation2 + $0x8] sm:$0xff]  ;;  %v2326_v28 = vld [vmem:[%s2795_s0 + $0x10] sm:$0xff] }
  0x18   :  { %v1983_v14 = vpack.c.bf16 %v339_v13, %v338_v12  ;;  %v2321_v27 = vld [vmem:[%s2795_s0 + $0x8] sm:$0xff]  ;;  %v2335_v29 = vld [vmem:[%s2795_s0 + $0x18] sm:$0xff]  ;;  %v2340_v30 = vld [vmem:[%s2795_s0 + $0x20] sm:$0xff] }
  0x19   :  { %v2349_v31 = vld [vmem:[%s2795_s0 + $0x28] sm:$0xff]  ;;  %v2354_v32 = vld [vmem:[%s2795_s0 + $0x30] sm:$0xff]  ;;  %v2363_v33 = vld [vmem:[%s2795_s0 + $0x38] sm:$0xff] }
  0x1a   :  { %1796 = vmatmul.mubr.msk.f32.vlgmr.msra.gmra.mrb[0].mxu1 %vm63_vm0, %v54_v4  ;;  %1984 = vmatprep.subr.bf16.mxu0 %v1983_v14  ;;  %v340_v34 = vld [vmem:[#allocation2 + $0x10] sm:$0xff]  ;;  %v341_v35 = vld [vmem:[#allocation2 + $0x18] sm:$0xff]  ;;  %v1637_v37 = vld [vmem:[%s2798_s3] ss:$0 sm:$0xff] }
  0x1b   :  { %1798 = vmatprep.mubr.msk.f32.mxu1 %vm63_vm0, %v55_v5  ;;  %1986 = vmatpush3.bf16.msra.mxu0 %v1983_v14  ;;  %v1987_v36 = vpack.c.bf16 %v341_v35, %v340_v34 }
  0x1d   :  { %1988 = vmatprep.subr.bf16.mxu0 %v1987_v36 }
  0x1e   :  { %1799 = vmatmul.mubr.msk.f32.gmra.mrb[2].mxu1 %vm63_vm0, %v56_v6 }
  0x1f   :  { %1801 = vmatprep.mubr.msk.f32.mxu1 %vm63_vm0, %v57_v7  ;;  %1990 = vmatpush3.bf16.msra.mxu0 %v1987_v36 }
  0x22   :  { %1802 = vmatmul.mubr.msk.f32.gmra.mrb[4].mxu1 %vm63_vm0, %v58_v8 }
  0x23   :  { %1804 = vmatprep.mubr.msk.f32.mxu1 %vm63_vm0, %v59_v9 }
  0x26   :  { %1805 = vmatmul.mubr.msk.f32.gmra.mrb[6].mxu1 %vm63_vm0, %v60_v10  ;;  %v1654_v10 = vld [vmem:[%s2800_s5] ss:$0 sm:$0xff] }
  0x27   :  { %1823 = vmatprep.mubr.msk.f32.mxu1 %vm200_vm1, %v45_v11 }
  0xed   :  { %v1797_v15 = vpop.f32.mrb[0].mxu1 }
  0xee   :  { %v154_v16 = vpop.f32.mrb[1].mxu1 }
  0xef   :  { %v1967_v17 = vpack.c.bf16 %v1797_v15, %v154_v16 }
  0xf1   :  { %v1800_v18 = vpop.f32.mrb[2].mxu1  ;;  %1968 = vmatprep.subr.bf16.mxu1 %v1967_v17 }
  0xf2   :  { %v164_v19 = vpop.f32.mrb[3].mxu1  ;;  %1970 = vmatpush3.bf16.msra.mxu1 %v1967_v17 }
  0xf3   :  { %v1971_v20 = vpack.c.bf16 %v1800_v18, %v164_v19 }
  0xf5   :  { %v1803_v21 = vpop.f32.mrb[4].mxu1  ;;  %1972 = vmatprep.subr.bf16.mxu1 %v1971_v20 }
  0xf6   :  { %v174_v22 = vpop.f32.mrb[5].mxu1  ;;  %1974 = vmatpush3.bf16.msra.mxu1 %v1971_v20 }
  0xf7   :  { %v1975_v23 = vpack.c.bf16 %v1803_v21, %v174_v22 }
  0xf9   :  { %v1806_v24 = vpop.f32.mrb[6].mxu1  ;;  %1976 = vmatprep.subr.bf16.mxu1 %v1975_v23 }
  0xfa   :  { %v184_v25 = vpop.f32.mrb[7].mxu1  ;;  %1978 = vmatpush3.bf16.msra.mxu1 %v1975_v23 }
  0xfb   :  { %v1979_v26 = vpack.c.bf16 %v1806_v24, %v184_v25 }
  0xfd   :  { %1980 = vmatprep.subr.bf16.mxu1 %v1979_v26 }
  0xfe   :  { %1982 = vmatpush3.bf16.msra.mxu1 %v1979_v26 }
 0x101   :  { %1824 = vmatmul.mubr.msk.f32.vlgmr.msra.gmra.mrb[8].mxu1 %vm200_vm1, %v2321_v27 }
 0x102   :  { %1826 = vmatprep.mubr.msk.f32.mxu1 %vm200_vm1, %v2326_v28 }
 0x105   :  { %1827 = vmatmul.mubr.msk.f32.gmra.mrb[10].mxu1 %vm200_vm1, %v2335_v29 }
 0x106   :  { %1829 = vmatprep.mubr.msk.f32.mxu1 %vm200_vm1, %v2340_v30 }
 0x109   :  { %1830 = vmatmul.mubr.msk.f32.gmra.mrb[12].mxu1 %vm200_vm1, %v2349_v31 }
 0x10a   :  { %1832 = vmatprep.mubr.msk.f32.mxu1 %vm200_vm1, %v2354_v32 }
 0x10d   :  { %1833 = vmatmul.mubr.msk.f32.gmra.mrb[14].mxu1 %vm200_vm1, %v2363_v33 }
 0x10e   :  { %1871 = vmatprep.mubr.msk.f32.mxu1 %vm200_vm1, %v45_v11 }
 0x1d4   :  { %v1825_v38 = vpop.f32.mrb[8].mxu1 }
 0x1d5   :  { %v297_v39 = vadd.f32 %v1825_v38, %v1637_v37  ;;  %v291_v40 = vpop.f32.mrb[9].mxu1 }
 0x1d6   :  { %v292_v41 = vadd.f32 %v1637_v37, %v291_v40 }
 0x1d7   :  { %v331_v44 = vmax.f32 %v297_v39, 0.0 }
 0x1d8   :  { %v330_v42 = vmax.f32 %v292_v41, 0.0  ;;  %v1828_v43 = vpop.f32.mrb[10].mxu1 }
 0x1d9   :  { %v307_v45 = vadd.f32 %v1828_v43, %v1637_v37  ;;  %v301_v46 = vpop.f32.mrb[11].mxu1  ;;  %v651_v43 = vld [vmem:[%s2801_s6] sm:$0xff] }
 0x1da   :  { %v302_v47 = vadd.f32 %v1637_v37, %v301_v46  ;;  %1843 = vmatprep.mubr.msk.f32.mxu0 %vm342_vm2, %v330_v42  ;;  %1883 = vmatprep.subr.msk.mxu0 %vm342_vm2, %v651_v43 }
 0x1db   :  { %1844 = vmatmul.mubr.msk.f32.vlgmr.msra.gmra.mrb[0].mxu0 %vm342_vm2, %v331_v44  ;;  %v333_v50 = vmax.f32 %v307_v45, 0.0  ;;  %v2205_v44 = vmov 0.0|0.0  }
 0x1dc   :  { %v332_v48 = vmax.f32 %v302_v47, 0.0  ;;  %v1831_v49 = vpop.f32.mrb[12].mxu1  ;;  %1884 = vmatpush3.xpose.msk.msra.mxu0 %vm342_vm2, %v651_v43 }
 0x1dd   :  { %v317_v51 = vadd.f32 %v1831_v49, %v1637_v37  ;;  %v311_v52 = vpop.f32.mrb[13].mxu1 }
 0x1de   :  { %v312_v53 = vadd.f32 %v1637_v37, %v311_v52  ;;  %1846 = vmatprep.mubr.msk.f32.mxu0 %vm342_vm2, %v332_v48 }
 0x1df   :  { %1847 = vmatmul.mubr.msk.f32.gmra.mrb[2].mxu0 %vm342_vm2, %v333_v50  ;;  %v335_v56 = vmax.f32 %v317_v51, 0.0 }
 0x1e0   :  { %v334_v54 = vmax.f32 %v312_v53, 0.0  ;;  %v1834_v55 = vpop.f32.mrb[14].mxu1 }
 0x1e1   :  { %v327_v57 = vadd.f32 %v1834_v55, %v1637_v37  ;;  %v321_v58 = vpop.f32.mrb[15].mxu1 }
 0x1e2   :  { %v322_v59 = vadd.f32 %v1637_v37, %v321_v58  ;;  %1849 = vmatprep.mubr.msk.f32.mxu0 %vm342_vm2, %v334_v54 }
 0x1e3   :  { %1850 = vmatmul.mubr.msk.f32.gmra.mrb[4].mxu0 %vm342_vm2, %v335_v56  ;;  %v337_v61 = vmax.f32 %v327_v57, 0.0 }
 0x1e4   :  { %v336_v60 = vmax.f32 %v322_v59, 0.0 }
 0x1e6   :  { %1852 = vmatprep.mubr.msk.f32.mxu0 %vm342_vm2, %v336_v60 }
 0x1e7   :  { %1853 = vmatmul.mubr.msk.f32.gmra.mrb[6].mxu0 %vm342_vm2, %v337_v61 }
 0x2ae   :  { %v1845_v62 = vpop.f32.mrb[0].mxu0 }
 0x2af   :  { %v433_v63 = vpop.f32.mrb[1].mxu0 }
 0x2b0   :  { %v1991_v0 = vpack.c.bf16 %v1845_v62, %v433_v63 }
 0x2b2   :  { %v1848_v1 = vpop.f32.mrb[2].mxu0  ;;  %1992 = vmatprep.subr.bf16.mxu1 %v1991_v0 }
 0x2b3   :  { %v443_v2 = vpop.f32.mrb[3].mxu0  ;;  %1994 = vmatpush3.bf16.msra.mxu1 %v1991_v0 }
 0x2b4   :  { %v1995_v3 = vpack.c.bf16 %v1848_v1, %v443_v2 }
 0x2b6   :  { %v1851_v4 = vpop.f32.mrb[4].mxu0  ;;  %1996 = vmatprep.subr.bf16.mxu1 %v1995_v3 }
 0x2b7   :  { %v453_v5 = vpop.f32.mrb[5].mxu0  ;;  %1998 = vmatpush3.bf16.msra.mxu1 %v1995_v3 }
 0x2b8   :  { %v1999_v6 = vpack.c.bf16 %v1851_v4, %v453_v5 }
 0x2ba   :  { %v1854_v7 = vpop.f32.mrb[6].mxu0  ;;  %2000 = vmatprep.subr.bf16.mxu1 %v1999_v6 }
 0x2bb   :  { %v463_v8 = vpop.f32.mrb[7].mxu0  ;;  %2002 = vmatpush3.bf16.msra.mxu1 %v1999_v6 }
 0x2bc   :  { %v2003_v9 = vpack.c.bf16 %v1854_v7, %v463_v8 }
 0x2be   :  { %2004 = vmatprep.subr.bf16.mxu1 %v2003_v9 }
 0x2bf   :  { %2006 = vmatpush3.bf16.msra.mxu1 %v2003_v9 }
 0x2c0   :  { %2007 = vmatprep.subr.bf16.mxu1 %v2205_v44 }
 0x2c2   :  { %1872 = vmatmul.mubr.msk.f32.vlgmr.msra.gmra.mrb[16].mxu1 %vm200_vm1, %v2321_v27 }
 0x2c3   :  { %1874 = vmatprep.mubr.msk.f32.mxu1 %vm200_vm1, %v2326_v28 }
 0x2c6   :  { %1875 = vmatmul.mubr.msk.f32.gmra.mrb[18].mxu1 %vm200_vm1, %v2335_v29 }
 0x2c7   :  { %1877 = vmatprep.mubr.msk.f32.mxu1 %vm200_vm1, %v2340_v30 }
 0x2ca   :  { %1878 = vmatmul.mubr.msk.f32.gmra.mrb[20].mxu1 %vm200_vm1, %v2349_v31 }
 0x2cb   :  { %1880 = vmatprep.mubr.msk.f32.mxu1 %vm200_vm1, %v2354_v32 }
 0x2ce   :  { %1881 = vmatmul.mubr.msk.f32.gmra.mrb[22].mxu1 %vm200_vm1, %v2363_v33 }
 0x395   :  { %v1873_v11 = vpop.f32.mrb[16].mxu1 }
 0x396   :  { %v2396_v12 = vadd.f32 %v1873_v11, %v1654_v10  ;;  %v545_v13 = vpop.f32.mrb[17].mxu1 }
 0x397   :  { %v2398_v14 = vadd.f32 %v1654_v10, %v545_v13 }
 0x398   :  { %585 = vst.msk [vmem:[%s2804_s9 + $0x8] sm:$0xff] %vm342_vm2, %v2396_v12  ;;  %v593_v21 = vmul.f32 %v2396_v12, %v2396_v12 }
 0x399   :  { %584 = vst.msk [vmem:[%s2804_s9] sm:$0xff] %vm342_vm2, %v2398_v14  ;;  %v1876_v15 = vpop.f32.mrb[18].mxu1  ;;  %v592_v16 = vmul.f32 %v2398_v14, %v2398_v14 }
 0x39a   :  { %v2412_v17 = vadd.f32 %v1876_v15, %v1654_v10  ;;  %v555_v18 = vpop.f32.mrb[19].mxu1  ;;  %v603_v28 = vsel %vm342_vm2, %v593_v21, 0.0 }
 0x39b   :  { %v2414_v19 = vadd.f32 %v1654_v10, %v555_v18  ;;  %v600_v20 = vsel %vm342_vm2, %v592_v16, 0.0 }
 0x39c   :  { %587 = vst.msk [vmem:[%s2804_s9 + $0x18] sm:$0xff] %vm342_vm2, %v2412_v17  ;;  %601 = vadd.xlane.f32.xlu0 %v600_v20  ;;  %v595_v29 = vmul.f32 %v2412_v17, %v2412_v17 }
 0x39d   :  { %586 = vst.msk [vmem:[%s2804_s9 + $0x10] sm:$0xff] %vm342_vm2, %v2414_v19  ;;  %v1879_v22 = vpop.f32.mrb[20].mxu1  ;;  %v594_v23 = vmul.f32 %v2414_v19, %v2414_v19 }
 0x39e   :  { %v2431_v24 = vadd.f32 %v1879_v22, %v1654_v10  ;;  %v565_v25 = vpop.f32.mrb[21].mxu1  ;;  %v609_v35 = vsel %vm342_vm2, %v595_v29, 0.0 }
 0x39f   :  { %v2433_v26 = vadd.f32 %v1654_v10, %v565_v25  ;;  %v606_v27 = vsel %vm342_vm2, %v594_v23, 0.0 }
 0x3a0   :  { %589 = vst.msk [vmem:[%s2804_s9 + $0x28] sm:$0xff] %vm342_vm2, %v2431_v24  ;;  %607 = vadd.xlane.f32.xlu1 %v606_v27  ;;  %604 = vadd.xlane.f32.xlu0 %v603_v28  ;;  %v597_v37 = vmul.f32 %v2431_v24, %v2431_v24 }
 0x3a1   :  { %588 = vst.msk [vmem:[%s2804_s9 + $0x20] sm:$0xff] %vm342_vm2, %v2433_v26  ;;  %v1882_v30 = vpop.f32.mrb[22].mxu1  ;;  %v596_v31 = vmul.f32 %v2433_v26, %v2433_v26 }
 0x3a2   :  { %v2451_v32 = vadd.f32 %v1882_v30, %v1654_v10  ;;  %v575_v33 = vpop.f32.mrb[23].mxu1  ;;  %v615_v39 = vsel %vm342_vm2, %v597_v37, 0.0 }
 0x3a3   :  { %v2453_v34 = vadd.f32 %v1654_v10, %v575_v33  ;;  %v612_v36 = vsel %vm342_vm2, %v596_v31, 0.0 }
 0x3a4   :  { %591 = vst.msk [vmem:[%s2804_s9 + $0x38] sm:$0xff] %vm342_vm2, %v2451_v32  ;;  %610 = vadd.xlane.f32.xlu1 %v609_v35  ;;  %613 = vadd.xlane.f32.xlu0 %v612_v36  ;;  %v599_v41 = vmul.f32 %v2451_v32, %v2451_v32 }
 0x3a5   :  { %590 = vst.msk [vmem:[%s2804_s9 + $0x30] sm:$0xff] %vm342_vm2, %v2453_v34  ;;  %v598_v38 = vmul.f32 %v2453_v34, %v2453_v34 }
 0x3a6   :  { %v621_v42 = vsel %vm342_vm2, %v599_v41, 0.0 }
 0x3a7   :  { %v618_v40 = vsel %vm342_vm2, %v598_v38, 0.0 }
 0x3a8   :  { %616 = vadd.xlane.f32.xlu1 %v615_v39  ;;  %619 = vadd.xlane.f32.xlu0 %v618_v40 }
 0x3ac   :  { %622 = vadd.xlane.f32.xlu1 %v621_v42 }
 0x429   :  { %v602_v45 = vpop.xlane.xlu0 %601 }
 0x42a   :  { %v624_v46 = vadd.f32 1e-12, %v602_v45 }
 0x42c   :  { %2038 = vrsqrt.f32 %v624_v46 }
 0x42d   :  { %v608_v47 = vpop.xlane.xlu1 %607  ;;  %v605_v48 = vpop.xlane.xlu0 %604 }
 0x42e   :  { %v626_v49 = vadd.f32 1e-12, %v608_v47  ;;  %v625_v50 = vadd.f32 1e-12, %v605_v48 }
 0x430   :  { %2040 = vrsqrt.f32 %v626_v49 }
 0x431   :  { %2042 = vrsqrt.f32 %v625_v50  ;;  %v611_v51 = vpop.xlane.xlu1 %610  ;;  %v614_v52 = vpop.xlane.xlu0 %613 }
 0x432   :  { %v627_v53 = vadd.f32 1e-12, %v611_v51  ;;  %v628_v54 = vadd.f32 1e-12, %v614_v52 }
 0x434   :  { %2044 = vrsqrt.f32 %v627_v53 }
 0x435   :  { %2046 = vrsqrt.f32 %v628_v54  ;;  %v617_v55 = vpop.xlane.xlu1 %616  ;;  %v620_v56 = vpop.xlane.xlu0 %619 }
 0x436   :  { %v2039_v57 = vpop.eup %2038  ;;  %v629_v58 = vadd.f32 1e-12, %v617_v55  ;;  %v630_v59 = vadd.f32 1e-12, %v620_v56 }
 0x437   :  { %v2483_v60 = vmul.f32 %v2039_v57, %v2398_v14 }
 0x438   :  { %2048 = vrsqrt.f32 %v629_v58 }
 0x439   :  { %2050 = vrsqrt.f32 %v630_v59  ;;  %v623_v61 = vpop.xlane.xlu1 %622  ;;  %1885 = vmatprep.mubr.msk.f32.mxu0 %vm342_vm2, %v2483_v60 }
 0x43a   :  { %v2041_v62 = vpop.eup %2040  ;;  %v631_v63 = vadd.f32 1e-12, %v623_v61 }
 0x43b   :  { %v2043_v0 = vpop.eup %2042  ;;  %v2488_v1 = vmul.f32 %v2041_v62, %v2414_v19 }
 0x43c   :  { %v2491_v2 = vmul.f32 %v2043_v0, %v2396_v12  ;;  %2052 = vrsqrt.f32 %v631_v63 }
 0x43e   :  { %v2045_v3 = vpop.eup %2044  ;;  %1886 = vmatmul.mubr.msk.f32.vlgmr.msra.gmra.mrb[8].mxu0 %vm342_vm2, %v2491_v2  ;;  %v2497_v4 = vpack.c.bf16 %v2491_v2, %v2483_v60 }
 0x43f   :  { %v2047_v5 = vpop.eup %2046  ;;  %1888 = vmatprep.mubr.msk.f32.mxu0 %vm342_vm2, %v2488_v1  ;;  %v2502_v6 = vmul.f32 %v2045_v3, %v2412_v17  ;;  %v648_v17 = vlaneseq }
 0x440   :  { %2009 = vmatpush3.bf16.msra.mxu1 %v2497_v4  ;;  %v2506_v7 = vmul.f32 %v2047_v5, %v2433_v26 }
 0x441   :  { %2010 = vmatprep.subr.bf16.mxu1 %v2205_v44  ;;  %v2511_v8 = vpack.c.bf16 %v2502_v6, %v2488_v1  ;;  %v2548_v18 = vand.u32 127, %v648_v17 }
 0x442   :  { %v2049_v9 = vpop.eup %2048  ;;  %1889 = vmatmul.mubr.msk.f32.gmra.mrb[10].mxu0 %vm342_vm2, %v2502_v6 }
 0x443   :  { %v2051_v10 = vpop.eup %2050  ;;  %1891 = vmatprep.mubr.msk.f32.mxu0 %vm342_vm2, %v2506_v7  ;;  %v2518_v11 = vmul.f32 %v2049_v9, %v2431_v24  ;;  %vm650_vm3 = vcmp.lt.s32.totalorder %v2548_v18, 3 }
 0x444   :  { %2012 = vmatpush3.bf16.msra.mxu1 %v2511_v8  ;;  %v2522_v12 = vmul.f32 %v2051_v10, %v2453_v34 }
 0x445   :  { %2013 = vmatprep.subr.bf16.mxu1 %v2205_v44  ;;  %v2527_v13 = vpack.c.bf16 %v2518_v11, %v2506_v7 }
 0x446   :  { %v2053_v14 = vpop.eup %2052  ;;  %1892 = vmatmul.mubr.msk.f32.gmra.mrb[12].mxu0 %vm342_vm2, %v2518_v11 }
 0x447   :  { %1894 = vmatprep.mubr.msk.f32.mxu0 %vm342_vm2, %v2522_v12  ;;  %v2534_v15 = vmul.f32 %v2053_v14, %v2451_v32 }
 0x448   :  { %2015 = vmatpush3.bf16.msra.mxu1 %v2527_v13 }
 0x449   :  { %2016 = vmatprep.subr.bf16.mxu1 %v2205_v44  ;;  %v2540_v16 = vpack.c.bf16 %v2534_v15, %v2522_v12 }
 0x44a   :  { %1895 = vmatmul.mubr.msk.f32.gmra.mrb[14].mxu0 %vm342_vm2, %v2534_v15 }
 0x44b   :  { %1918 = vmatprep.mubr.msk.f32.mxu0 %vm342_vm2, %v2483_v60 }
 0x44c   :  { %2018 = vmatpush3.bf16.msra.mxu1 %v2540_v16 }
 0x44d   :  { %2019 = vmatprep.subr.bf16.mxu1 %v2205_v44 }
 0x511   :  { %v1887_v19 = vpop.f32.mrb[8].mxu0 }
 0x512   :  { %v785_v20 = vmul.f32 50.0, %v1887_v19  ;;  %v745_v21 = vpop.f32.mrb[9].mxu0 }
 0x513   :  { %v784_v22 = vmul.f32 50.0, %v745_v21 }
 0x514   :  { %v793_v23 = vsel %vm650_vm3, %v785_v20, -1e+30 }
 0x515   :  { %v1890_v24 = vpop.f32.mrb[10].mxu0  ;;  %v804_v25 = vsel %vm800_vm4, %v793_v23, -inf  ;;  %v792_v26 = vsel %vm650_vm3, %v784_v22, -1e+30 }
 0x516   :  { %v787_v27 = vmul.f32 50.0, %v1890_v24  ;;  %805 = vmax.xlane.f32.xlu1 %v804_v25  ;;  %v755_v28 = vpop.f32.mrb[11].mxu0  ;;  %v801_v29 = vsel %vm800_vm4, %v792_v26, -inf }
 0x517   :  { %v786_v30 = vmul.f32 50.0, %v755_v28  ;;  %802 = vmax.xlane.f32.xlu0 %v801_v29 }
 0x518   :  { %v795_v31 = vsel %vm650_vm3, %v787_v27, -1e+30 }
 0x519   :  { %v1893_v32 = vpop.f32.mrb[12].mxu0  ;;  %v810_v33 = vsel %vm800_vm4, %v795_v31, -inf  ;;  %v794_v34 = vsel %vm650_vm3, %v786_v30, -1e+30 }
 0x51a   :  { %v789_v35 = vmul.f32 50.0, %v1893_v32  ;;  %811 = vmax.xlane.f32.xlu1 %v810_v33  ;;  %v765_v36 = vpop.f32.mrb[13].mxu0  ;;  %v807_v37 = vsel %vm800_vm4, %v794_v34, -inf }
 0x51b   :  { %v788_v38 = vmul.f32 50.0, %v765_v36  ;;  %808 = vmax.xlane.f32.xlu0 %v807_v37 }
 0x51c   :  { %v797_v39 = vsel %vm650_vm3, %v789_v35, -1e+30 }
 0x51d   :  { %v1896_v40 = vpop.f32.mrb[14].mxu0  ;;  %v816_v41 = vsel %vm800_vm4, %v797_v39, -inf  ;;  %v796_v42 = vsel %vm650_vm3, %v788_v38, -1e+30 }
 0x51e   :  { %v791_v43 = vmul.f32 50.0, %v1896_v40  ;;  %817 = vmax.xlane.f32.xlu1 %v816_v41  ;;  %v775_v45 = vpop.f32.mrb[15].mxu0  ;;  %v813_v46 = vsel %vm800_vm4, %v796_v42, -inf  ;;  %v2207_v41 = vmov 0.0  }
 0x51f   :  { %v790_v47 = vmul.f32 50.0, %v775_v45  ;;  %814 = vmax.xlane.f32.xlu0 %v813_v46  ;;  %1913 = vmatprep.mubr.msk.f32.mxu1 %vm2206_vm5, %v2207_v41 }
 0x520   :  { %v799_v48 = vsel %vm650_vm3, %v791_v43, -1e+30 }
 0x521   :  { %v822_v49 = vsel %vm800_vm4, %v799_v48, -inf  ;;  %v798_v50 = vsel %vm650_vm3, %v790_v47, -1e+30 }
 0x522   :  { %823 = vmax.xlane.f32.xlu1 %v822_v49  ;;  %v819_v51 = vsel %vm800_vm4, %v798_v50, -inf }
 0x523   :  { %820 = vmax.xlane.f32.xlu0 %v819_v51 }
 0x5a3   :  { %v806_v52 = vpop.xlane.xlu1 %805 }
 0x5a4   :  { %v826_v53 = vsub.f32 %v793_v23, %v806_v52  ;;  %v803_v54 = vpop.xlane.xlu0 %802 }
 0x5a5   :  { %v825_v55 = vsub.f32 %v792_v26, %v803_v54 }
 0x5a6   :  { %v835_v56 = vmul.f32 1.442695, %v826_v53 }
 0x5a7   :  { %v833_v57 = vmul.f32 1.442695, %v825_v55  ;;  %v812_v58 = vpop.xlane.xlu1 %811 }
 0x5a8   :  { %2054 = vpow2.f32 %v835_v56  ;;  %v828_v59 = vsub.f32 %v795_v31, %v812_v58  ;;  %v809_v61 = vpop.xlane.xlu0 %808 }
 0x5a9   :  { %2056 = vpow2.f32 %v833_v57  ;;  %v827_v62 = vsub.f32 %v794_v34, %v809_v61 }
 0x5aa   :  { %v839_v63 = vmul.f32 1.442695, %v828_v59 }
 0x5ab   :  { %v837_v0 = vmul.f32 1.442695, %v827_v62  ;;  %v818_v3 = vpop.xlane.xlu1 %817 }
 0x5ac   :  { %2058 = vpow2.f32 %v839_v63  ;;  %v830_v5 = vsub.f32 %v797_v39, %v818_v3  ;;  %v815_v9 = vpop.xlane.xlu0 %814 }
 0x5ad   :  { %2060 = vpow2.f32 %v837_v0  ;;  %v829_v10 = vsub.f32 %v796_v42, %v815_v9 }
 0x5ae   :  { %v843_v14 = vmul.f32 1.442695, %v830_v5 }
 0x5af   :  { %v841_v17 = vmul.f32 1.442695, %v829_v10  ;;  %v824_v19 = vpop.xlane.xlu1 %823 }
 0x5b0   :  { %2062 = vpow2.f32 %v843_v14  ;;  %v832_v20 = vsub.f32 %v799_v48, %v824_v19  ;;  %v821_v21 = vpop.xlane.xlu0 %820 }
 0x5b1   :  { %2064 = vpow2.f32 %v841_v17  ;;  %v831_v22 = vsub.f32 %v798_v50, %v821_v21 }
 0x5b2   :  { %v2055_v23 = vpop.eup %2054  ;;  %v847_v24 = vmul.f32 1.442695, %v832_v20 }
 0x5b3   :  { %v2057_v25 = vpop.eup %2056  ;;  %v845_v26 = vmul.f32 1.442695, %v831_v22  ;;  %v852_v27 = vsel %vm800_vm4, %v2055_v23, 0.0 }
 0x5b4   :  { %2066 = vpow2.f32 %v847_v24  ;;  %853 = vadd.xlane.f32.xlu1 %v852_v27  ;;  %v849_v28 = vsel %vm800_vm4, %v2057_v25, 0.0 }
 0x5b5   :  { %2068 = vpow2.f32 %v845_v26  ;;  %850 = vadd.xlane.f32.xlu0 %v849_v28 }
 0x5b6   :  { %v2059_v29 = vpop.eup %2058 }
 0x5b7   :  { %v2061_v30 = vpop.eup %2060  ;;  %v858_v31 = vsel %vm800_vm4, %v2059_v29, 0.0 }
 0x5b8   :  { %859 = vadd.xlane.f32.xlu1 %v858_v31  ;;  %v855_v32 = vsel %vm800_vm4, %v2061_v30, 0.0 }
 0x5b9   :  { %856 = vadd.xlane.f32.xlu0 %v855_v32 }
 0x5ba   :  { %v2063_v33 = vpop.eup %2062 }
 0x5bb   :  { %v2065_v34 = vpop.eup %2064  ;;  %v864_v35 = vsel %vm800_vm4, %v2063_v33, 0.0 }
 0x5bc   :  { %865 = vadd.xlane.f32.xlu1 %v864_v35  ;;  %v861_v36 = vsel %vm800_vm4, %v2065_v34, 0.0 }
 0x5bd   :  { %862 = vadd.xlane.f32.xlu0 %v861_v36 }
 0x5be   :  { %v2067_v37 = vpop.eup %2066 }
 0x5bf   :  { %v2069_v38 = vpop.eup %2068  ;;  %v870_v39 = vsel %vm800_vm4, %v2067_v37, 0.0 }
 0x5c0   :  { %871 = vadd.xlane.f32.xlu1 %v870_v39  ;;  %v867_v40 = vsel %vm800_vm4, %v2069_v38, 0.0 }
 0x5c1   :  { %868 = vadd.xlane.f32.xlu0 %v867_v40 }
 0x641   :  { %v854_v42 = vpop.xlane.xlu1 %853 }
 0x642   :  { %2070 = vrcp.f32 %v854_v42  ;;  %v851_v43 = vpop.xlane.xlu0 %850 }
 0x643   :  { %2072 = vrcp.f32 %v851_v43 }
 0x645   :  { %v860_v45 = vpop.xlane.xlu1 %859 }
 0x646   :  { %2074 = vrcp.f32 %v860_v45  ;;  %v857_v46 = vpop.xlane.xlu0 %856 }
 0x647   :  { %2076 = vrcp.f32 %v857_v46 }
 0x649   :  { %v866_v47 = vpop.xlane.xlu1 %865 }
 0x64a   :  { %2078 = vrcp.f32 %v866_v47  ;;  %v863_v48 = vpop.xlane.xlu0 %862 }
 0x64b   :  { %2080 = vrcp.f32 %v863_v48 }
 0x64c   :  { %v2071_v49 = vpop.eup %2070 }
 0x64d   :  { %v2073_v50 = vpop.eup %2072  ;;  %v872_v51 = vpop.xlane.xlu1 %871  ;;  %v876_v52 = vmul.f32 %v2071_v49, %v2055_v23 }
 0x64e   :  { %2082 = vrcp.f32 %v872_v51  ;;  %v869_v53 = vpop.xlane.xlu0 %868  ;;  %v874_v54 = vmul.f32 %v2073_v50, %v2057_v25 }
 0x64f   :  { %2084 = vrcp.f32 %v869_v53  ;;  %v890_v57 = vsel %vm800_vm4, %v876_v52, 0.0 }
 0x650   :  { %v2075_v55 = vpop.eup %2074  ;;  %v889_v56 = vsel %vm800_vm4, %v874_v54, 0.0 }
 0x651   :  { %v2077_v58 = vpop.eup %2076  ;;  %v880_v59 = vmul.f32 %v2075_v55, %v2059_v29  ;;  %v891_v62 = vadd.f32 %v890_v57, %v889_v56 }
 0x652   :  { %v878_v61 = vmul.f32 %v2077_v58, %v2061_v30 }
 0x653   :  { %v894_v14 = vsel %vm800_vm4, %v880_v59, 0.0 }
 0x654   :  { %v2079_v63 = vpop.eup %2078  ;;  %v892_v0 = vsel %vm800_vm4, %v878_v61, 0.0 }
 0x655   :  { %v2081_v3 = vpop.eup %2080  ;;  %v893_v5 = vadd.f32 %v892_v0, %v891_v62  ;;  %v884_v9 = vmul.f32 %v2079_v63, %v2063_v33 }
 0x656   :  { %v882_v10 = vmul.f32 %v2081_v3, %v2065_v34 }
 0x657   :  { %v895_v17 = vadd.f32 %v894_v14, %v893_v5  ;;  %v898_v23 = vsel %vm800_vm4, %v884_v9, 0.0 }
 0x658   :  { %v2083_v19 = vpop.eup %2082  ;;  %v896_v20 = vsel %vm800_vm4, %v882_v10, 0.0 }
 0x659   :  { %v2085_v21 = vpop.eup %2084  ;;  %v897_v22 = vadd.f32 %v896_v20, %v895_v17  ;;  %v888_v24 = vmul.f32 %v2083_v19, %v2067_v37 }
 0x65a   :  { %v886_v25 = vmul.f32 %v2085_v21, %v2069_v38 }
 0x65b   :  { %v899_v26 = vadd.f32 %v898_v23, %v897_v22  ;;  %v902_v29 = vsel %vm800_vm4, %v888_v24, 0.0 }
 0x65c   :  { %v900_v27 = vsel %vm800_vm4, %v886_v25, 0.0 }
 0x65d   :  { %v901_v28 = vadd.f32 %v900_v27, %v899_v26 }
 0x65f   :  { %v903_v30 = vadd.f32 %v902_v29, %v901_v28 }
 0x661   :  { %v904_v31 = vrot.slane %v903_v30, 4 }
 0x663   :  { %v905_v32 = vadd.f32 %v904_v31, %v903_v30 }
 0x665   :  { %v906_v33 = vrot.slane %v905_v32, 2 }
 0x667   :  { %v907_v34 = vadd.f32 %v906_v33, %v905_v32 }
 0x669   :  { %v908_v35 = vrot.slane %v907_v34, 1 }
 0x66b   :  { %v909_v36 = vadd.f32 %v908_v35, %v907_v34 }
 0x66d   :  { %v910_v39 = vadd.f32 1e-12, %v909_v36 }
 0x66f   :  { %2086 = vrcp.f32 %v910_v39 }
 0x679   :  { %v2087_v40 = vpop.eup %2086 }
 0x67a   :  { %v912_v42 = vmul.f32 %v2087_v40, %v874_v54  ;;  %v913_v37 = vmul.f32 %v2087_v40, %v876_v52  ;;  %v914_v38 = vmul.f32 %v2087_v40, %v878_v61  ;;  %v915_v43 = vmul.f32 %v2087_v40, %v880_v59 }
 0x67b   :  { %v916_v45 = vmul.f32 %v2087_v40, %v882_v10  ;;  %v917_v46 = vmul.f32 %v2087_v40, %v884_v9  ;;  %v918_v47 = vmul.f32 %v2087_v40, %v886_v25  ;;  %v919_v48 = vmul.f32 %v2087_v40, %v888_v24 }
 0x67c   :  { %920 = vxpose.xlu0.b32.start [1/8] (short) (narrow) %v912_v42, 8 }
 0x680   :  { %921 = vxpose.xlu0.b32.cont [2/8] (short) (narrow) %v913_v37, 8 }
 0x684   :  { %922 = vxpose.xlu0.b32.cont [3/8] (short) (narrow) %v914_v38, 8 }
 0x688   :  { %923 = vxpose.xlu0.b32.cont [4/8] (short) (narrow) %v915_v43, 8 }
 0x68c   :  { %924 = vxpose.xlu0.b32.cont [5/8] (short) (narrow) %v916_v45, 8 }
 0x690   :  { %925 = vxpose.xlu0.b32.cont [6/8] (short) (narrow) %v917_v46, 8 }
 0x694   :  { %926 = vxpose.xlu0.b32.cont [7/8] (short) (narrow) %v918_v47, 8 }
 0x698   :  { %927 = vxpose.xlu0.b32.end [8/8] (short) (narrow) %v919_v48, 8 }
 0x6fc   :  { %v936_v49 = vpop.trf.xlu0 }
 0x6fd   :  { %1914 = vmatmul.mubr.msk.f32.vlgmr.msra.gmra.mrb[24].mxu1 %vm200_vm1, %v936_v49 }
 0x6fe   :  { %2021 = vmatpush3.bf16.msra.mxu1 %v2497_v4  ;;  %1946 = vmatprep.mubr.msk.f32.mxu1 %vm2206_vm5, %v2207_v41 }
 0x6ff   :  { %2022 = vmatprep.subr.bf16.mxu1 %v2205_v44 }
 0x702   :  { %2024 = vmatpush3.bf16.msra.mxu1 %v2511_v8 }
 0x703   :  { %2025 = vmatprep.subr.bf16.mxu1 %v2205_v44 }
 0x706   :  { %2027 = vmatpush3.bf16.msra.mxu1 %v2527_v13 }
 0x707   :  { %2028 = vmatprep.subr.bf16.mxu1 %v2205_v44 }
 0x70a   :  { %2030 = vmatpush3.bf16.msra.mxu1 %v2540_v16 }
 0x7d0   :  { %v1021_v50 = vpop.f32.mrb[24].mxu1 }
 0x7d1   :  { %v1915_v51 = vpop.f32.mrb[25].mxu1  ;;  %1916 = vmatprep.subr.msk.mxu0 %vm342_vm2, %v1021_v50 }
 0x7d2   :  { %1917 = vmatpush3.xpose.msk.msra.mxu0 %vm342_vm2, %v1021_v50 }
 0x7d5   :  { %1919 = vmatmul.mubr.msk.f32.vlgmr.msra.gmra.mrb[16].mxu0 %vm342_vm2, %v2491_v2 }
 0x7d6   :  { %1921 = vmatprep.mubr.msk.f32.mxu0 %vm342_vm2, %v2488_v1 }
 0x7d9   :  { %1922 = vmatmul.mubr.msk.f32.gmra.mrb[18].mxu0 %vm342_vm2, %v2502_v6 }
 0x7da   :  { %1924 = vmatprep.mubr.msk.f32.mxu0 %vm342_vm2, %v2506_v7 }
 0x7dd   :  { %1925 = vmatmul.mubr.msk.f32.gmra.mrb[20].mxu0 %vm342_vm2, %v2518_v11 }
 0x7de   :  { %1927 = vmatprep.mubr.msk.f32.mxu0 %vm342_vm2, %v2522_v12 }
 0x7e1   :  { %1928 = vmatmul.mubr.msk.f32.gmra.mrb[22].mxu0 %vm342_vm2, %v2534_v15 }
 0x7e2   :  { %1951 = vmatprep.mubr.msk.f32.mxu0 %vm342_vm2, %v2483_v60 }
 0x8a8   :  { %v1920_v44 = vpop.f32.mrb[16].mxu0 }
 0x8a9   :  { %v1134_v4 = vmul.f32 50.0, %v1920_v44  ;;  %v1094_v8 = vpop.f32.mrb[17].mxu0 }
 0x8aa   :  { %v1133_v13 = vmul.f32 50.0, %v1094_v8 }
 0x8ab   :  { %v1142_v16 = vsel %vm650_vm3, %v1134_v4, -1e+30 }
 0x8ac   :  { %v1923_v41 = vpop.f32.mrb[18].mxu0  ;;  %v1152_v52 = vsel %vm800_vm4, %v1142_v16, -inf  ;;  %v1141_v55 = vsel %vm650_vm3, %v1133_v13, -1e+30 }
 0x8ad   :  { %v1136_v53 = vmul.f32 50.0, %v1923_v41  ;;  %1153 = vmax.xlane.f32.xlu1 %v1152_v52  ;;  %v1104_v54 = vpop.f32.mrb[19].mxu0  ;;  %v1149_v57 = vsel %vm800_vm4, %v1141_v55, -inf }
 0x8ae   :  { %v1135_v60 = vmul.f32 50.0, %v1104_v54 }
 0x8af   :  { %v1144_v59 = vsel %vm650_vm3, %v1136_v53, -1e+30 }
 0x8b0   :  { %v1926_v56 = vpop.f32.mrb[20].mxu0  ;;  %v1158_v62 = vsel %vm800_vm4, %v1144_v59, -inf  ;;  %v1143_v3 = vsel %vm650_vm3, %v1135_v60, -1e+30 }
 0x8b1   :  { %1150 = vmax.xlane.f32.xlu1 %v1149_v57  ;;  %v1114_v58 = vpop.f32.mrb[21].mxu0  ;;  %v1138_v63 = vmul.f32 50.0, %v1926_v56  ;;  %v1155_v5 = vsel %vm800_vm4, %v1143_v3, -inf }
 0x8b2   :  { %v1137_v9 = vmul.f32 50.0, %v1114_v58 }
 0x8b3   :  { %v1146_v10 = vsel %vm650_vm3, %v1138_v63, -1e+30 }
 0x8b4   :  { %v1929_v61 = vpop.f32.mrb[22].mxu0  ;;  %v1164_v14 = vsel %vm800_vm4, %v1146_v10, -inf  ;;  %v1145_v19 = vsel %vm650_vm3, %v1137_v9, -1e+30 }
 0x8b5   :  { %1159 = vmax.xlane.f32.xlu1 %v1158_v62  ;;  %v1124_v0 = vpop.f32.mrb[23].mxu0  ;;  %v1161_v20 = vsel %vm800_vm4, %v1145_v19, -inf  ;;  %v1140_v21 = vmul.f32 50.0, %v1929_v61 }
 0x8b6   :  { %v1139_v17 = vmul.f32 50.0, %v1124_v0 }
 0x8b7   :  { %v1148_v24 = vsel %vm650_vm3, %v1140_v21, -1e+30 }
 0x8b8   :  { %v1147_v22 = vsel %vm650_vm3, %v1139_v17, -1e+30  ;;  %v1170_v25 = vsel %vm800_vm4, %v1148_v24, -inf }
 0x8b9   :  { %1156 = vmax.xlane.f32.xlu1 %v1155_v5  ;;  %v1167_v23 = vsel %vm800_vm4, %v1147_v22, -inf }
 0x8bd   :  { %1165 = vmax.xlane.f32.xlu1 %v1164_v14 }
 0x8c1   :  { %1162 = vmax.xlane.f32.xlu1 %v1161_v20 }
 0x8c5   :  { %1168 = vmax.xlane.f32.xlu1 %v1167_v23 }
 0x8c9   :  { %1171 = vmax.xlane.f32.xlu1 %v1170_v25 }
 0x93a   :  { %v1154_v26 = vpop.xlane.xlu1 %1153 }
 0x93b   :  { %v1174_v27 = vsub.f32 %v1142_v16, %v1154_v26 }
 0x93d   :  { %v1183_v28 = vmul.f32 1.442695, %v1174_v27 }
 0x93e   :  { %v1151_v29 = vpop.xlane.xlu1 %1150 }
 0x93f   :  { %2088 = vpow2.f32 %v1183_v28  ;;  %v1173_v30 = vsub.f32 %v1141_v55, %v1151_v29 }
 0x941   :  { %v1181_v31 = vmul.f32 1.442695, %v1173_v30 }
 0x942   :  { %v1160_v32 = vpop.xlane.xlu1 %1159 }
 0x943   :  { %2090 = vpow2.f32 %v1181_v31  ;;  %v1176_v33 = vsub.f32 %v1144_v59, %v1160_v32 }
 0x945   :  { %v1187_v34 = vmul.f32 1.442695, %v1176_v33 }
 0x946   :  { %v1157_v35 = vpop.xlane.xlu1 %1156 }
 0x947   :  { %2092 = vpow2.f32 %v1187_v34  ;;  %v1175_v36 = vsub.f32 %v1143_v3, %v1157_v35 }
 0x949   :  { %v2089_v39 = vpop.eup %2088  ;;  %v1185_v40 = vmul.f32 1.442695, %v1175_v36 }
 0x94a   :  { %v1166_v42 = vpop.xlane.xlu1 %1165  ;;  %v1200_v37 = vsel %vm800_vm4, %v2089_v39, 0.0 }
 0x94b   :  { %2094 = vpow2.f32 %v1185_v40  ;;  %v1178_v38 = vsub.f32 %v1146_v10, %v1166_v42  ;;  %1201 = vadd.xlane.f32.xlu1 %v1200_v37 }
 0x94d   :  { %v2091_v43 = vpop.eup %2090  ;;  %v1191_v45 = vmul.f32 1.442695, %v1178_v38 }
 0x94e   :  { %v1163_v46 = vpop.xlane.xlu1 %1162  ;;  %v1197_v47 = vsel %vm800_vm4, %v2091_v43, 0.0 }
 0x94f   :  { %2096 = vpow2.f32 %v1191_v45  ;;  %v1177_v48 = vsub.f32 %v1145_v19, %v1163_v46  ;;  %1198 = vadd.xlane.f32.xlu1 %v1197_v47 }
 0x951   :  { %v2093_v49 = vpop.eup %2092  ;;  %v1189_v50 = vmul.f32 1.442695, %v1177_v48 }
 0x952   :  { %v1169_v51 = vpop.xlane.xlu1 %1168  ;;  %v1206_v44 = vsel %vm800_vm4, %v2093_v49, 0.0 }
 0x953   :  { %2098 = vpow2.f32 %v1189_v50  ;;  %v1179_v4 = vsub.f32 %v1147_v22, %v1169_v51  ;;  %1207 = vadd.xlane.f32.xlu1 %v1206_v44 }
 0x955   :  { %v2095_v8 = vpop.eup %2094  ;;  %v1193_v13 = vmul.f32 1.442695, %v1179_v4 }
 0x956   :  { %v1172_v16 = vpop.xlane.xlu1 %1171  ;;  %v1203_v41 = vsel %vm800_vm4, %v2095_v8, 0.0 }
 0x957   :  { %2100 = vpow2.f32 %v1193_v13  ;;  %v1180_v52 = vsub.f32 %v1148_v24, %v1172_v16  ;;  %1204 = vadd.xlane.f32.xlu1 %v1203_v41 }
 0x959   :  { %v2097_v53 = vpop.eup %2096  ;;  %v1195_v54 = vmul.f32 1.442695, %v1180_v52 }
 0x95a   :  { %v1212_v55 = vsel %vm800_vm4, %v2097_v53, 0.0 }
 0x95b   :  { %2102 = vpow2.f32 %v1195_v54  ;;  %1213 = vadd.xlane.f32.xlu1 %v1212_v55 }
 0x95d   :  { %v2099_v56 = vpop.eup %2098 }
 0x95e   :  { %v1209_v57 = vsel %vm800_vm4, %v2099_v56, 0.0 }
 0x95f   :  { %1210 = vadd.xlane.f32.xlu1 %v1209_v57 }
 0x961   :  { %v2101_v60 = vpop.eup %2100 }
 0x962   :  { %v1215_v58 = vsel %vm800_vm4, %v2101_v60, 0.0 }
 0x963   :  { %1216 = vadd.xlane.f32.xlu1 %v1215_v58 }
 0x965   :  { %v2103_v59 = vpop.eup %2102 }
 0x966   :  { %v1218_v61 = vsel %vm800_vm4, %v2103_v59, 0.0 }
 0x967   :  { %1219 = vadd.xlane.f32.xlu1 %v1218_v61 }
 0x9d8   :  { %v1202_v62 = vpop.xlane.xlu1 %1201 }
 0x9dc   :  { %v1199_v63 = vpop.xlane.xlu1 %1198 }
 0x9dd   :  { %2104 = vrcp.f32 %v1199_v63 }
 0x9de   :  { %2106 = vrcp.f32 %v1202_v62 }
 0x9e0   :  { %v1208_v0 = vpop.xlane.xlu1 %1207 }
 0x9e4   :  { %v1205_v3 = vpop.xlane.xlu1 %1204 }
 0x9e5   :  { %2108 = vrcp.f32 %v1205_v3 }
 0x9e6   :  { %2110 = vrcp.f32 %v1208_v0 }
 0x9e7   :  { %v2105_v9 = vpop.eup %2104 }
 0x9e8   :  { %v1214_v5 = vpop.xlane.xlu1 %1213  ;;  %v2107_v10 = vpop.eup %2106  ;;  %v1222_v17 = vmul.f32 %v2105_v9, %v2091_v43 }
 0x9e9   :  { %2112 = vrcp.f32 %v1214_v5  ;;  %v1224_v19 = vmul.f32 %v2107_v10, %v2089_v39 }
 0x9ea   :  { %v1237_v23 = vsel %vm800_vm4, %v1222_v17, 0.0 }
 0x9eb   :  { %v1238_v25 = vsel %vm800_vm4, %v1224_v19, 0.0 }
 0x9ec   :  { %v1211_v14 = vpop.xlane.xlu1 %1210  ;;  %v1239_v27 = vadd.f32 %v1238_v25, %v1237_v23 }
 0x9ed   :  { %2114 = vrcp.f32 %v1211_v14 }
 0x9ef   :  { %v2109_v20 = vpop.eup %2108 }
 0x9f0   :  { %v1217_v21 = vpop.xlane.xlu1 %1216  ;;  %v1226_v22 = vmul.f32 %v2109_v20, %v2095_v8  ;;  %v2111_v24 = vpop.eup %2110 }
 0x9f1   :  { %2116 = vrcp.f32 %v1217_v21  ;;  %v1228_v28 = vmul.f32 %v2111_v24, %v2093_v49 }
 0x9f2   :  { %v1240_v26 = vsel %vm800_vm4, %v1226_v22, 0.0 }
 0x9f3   :  { %v2113_v30 = vpop.eup %2112  ;;  %v1241_v31 = vadd.f32 %v1240_v26, %v1239_v27  ;;  %v1242_v35 = vsel %vm800_vm4, %v1228_v28, 0.0 }
 0x9f4   :  { %v1220_v29 = vpop.xlane.xlu1 %1219  ;;  %v1232_v33 = vmul.f32 %v2113_v30, %v2097_v53 }
 0x9f5   :  { %2118 = vrcp.f32 %v1220_v29  ;;  %v1243_v36 = vadd.f32 %v1242_v35, %v1241_v31 }
 0x9f6   :  { %v1246_v37 = vsel %vm800_vm4, %v1232_v33, 0.0 }
 0x9f7   :  { %v2115_v32 = vpop.eup %2114 }
 0x9f8   :  { %v1230_v34 = vmul.f32 %v2115_v32, %v2099_v56 }
 0x9fa   :  { %v1244_v39 = vsel %vm800_vm4, %v1230_v34, 0.0 }
 0x9fb   :  { %v2117_v40 = vpop.eup %2116  ;;  %v1245_v42 = vadd.f32 %v1244_v39, %v1243_v36 }
 0x9fc   :  { %v1234_v38 = vmul.f32 %v2117_v40, %v2101_v60 }
 0x9fd   :  { %v1247_v43 = vadd.f32 %v1246_v37, %v1245_v42 }
 0x9fe   :  { %v1248_v45 = vsel %vm800_vm4, %v1234_v38, 0.0 }
 0x9ff   :  { %v2119_v46 = vpop.eup %2118  ;;  %v1249_v48 = vadd.f32 %v1248_v45, %v1247_v43 }
 0xa00   :  { %v1236_v47 = vmul.f32 %v2119_v46, %v2103_v59 }
 0xa02   :  { %v1250_v49 = vsel %vm800_vm4, %v1236_v47, 0.0 }
 0xa03   :  { %v1251_v50 = vadd.f32 %v1250_v49, %v1249_v48 }
 0xa05   :  { %v1252_v51 = vrot.slane %v1251_v50, 4 }
 0xa07   :  { %v1253_v44 = vadd.f32 %v1252_v51, %v1251_v50 }
 0xa09   :  { %v1254_v4 = vrot.slane %v1253_v44, 2 }
 0xa0b   :  { %v1255_v8 = vadd.f32 %v1254_v4, %v1253_v44 }
 0xa0d   :  { %v1256_v13 = vrot.slane %v1255_v8, 1 }
 0xa0f   :  { %v1257_v16 = vadd.f32 %v1256_v13, %v1255_v8 }
 0xa11   :  { %v1258_v41 = vadd.f32 1e-12, %v1257_v16 }
 0xa13   :  { %2120 = vrcp.f32 %v1258_v41 }
 0xa1d   :  { %v2121_v52 = vpop.eup %2120 }
 0xa1e   :  { %v1260_v53 = vmul.f32 %v2121_v52, %v1222_v17  ;;  %v1261_v54 = vmul.f32 %v2121_v52, %v1224_v19  ;;  %v1262_v55 = vmul.f32 %v2121_v52, %v1226_v22  ;;  %v1263_v56 = vmul.f32 %v2121_v52, %v1228_v28 }
 0xa1f   :  { %v1264_v57 = vmul.f32 %v2121_v52, %v1230_v34  ;;  %v1265_v60 = vmul.f32 %v2121_v52, %v1232_v33  ;;  %v1266_v58 = vmul.f32 %v2121_v52, %v1234_v38  ;;  %v1267_v59 = vmul.f32 %v2121_v52, %v1236_v47 }
 0xa20   :  { %1268 = vxpose.xlu1.b32.start [1/8] (short) (narrow) %v1260_v53, 8 }
 0xa24   :  { %1269 = vxpose.xlu1.b32.cont [2/8] (short) (narrow) %v1261_v54, 8 }
 0xa28   :  { %1270 = vxpose.xlu1.b32.cont [3/8] (short) (narrow) %v1262_v55, 8 }
 0xa2c   :  { %1271 = vxpose.xlu1.b32.cont [4/8] (short) (narrow) %v1263_v56, 8 }
 0xa30   :  { %1272 = vxpose.xlu1.b32.cont [5/8] (short) (narrow) %v1264_v57, 8 }
 0xa34   :  { %1273 = vxpose.xlu1.b32.cont [6/8] (short) (narrow) %v1265_v60, 8 }
 0xa38   :  { %1274 = vxpose.xlu1.b32.cont [7/8] (short) (narrow) %v1266_v58, 8 }
 0xa3c   :  { %1275 = vxpose.xlu1.b32.end [8/8] (short) (narrow) %v1267_v59, 8 }
 0xaa0   :  { %v1284_v61 = vpop.trf.xlu1 }
 0xaa1   :  { %1947 = vmatmul.mubr.msk.f32.vlgmr.msra.gmra.mrb[26].mxu1 %vm200_vm1, %v1284_v61 }
 0xb74   :  { %v1369_v62 = vpop.f32.mrb[26].mxu1 }
 0xb75   :  { %1585 = vst.msk [vmem:[#allocation5] sm:$0xff] %vm342_vm2, %v1369_v62  ;;  %v1948_v63 = vpop.f32.mrb[27].mxu1  ;;  %1949 = vmatprep.subr.msk.mxu0 %vm342_vm2, %v1369_v62 }
 0xb76   :  { %1950 = vmatpush3.xpose.msk.msra.mxu0 %vm342_vm2, %v1369_v62 }
 0xb79   :  { %1952 = vmatmul.mubr.msk.f32.vlgmr.msra.gmra.mrb[24].mxu0 %vm342_vm2, %v2491_v2 }
 0xb7a   :  { %1954 = vmatprep.mubr.msk.f32.mxu0 %vm342_vm2, %v2488_v1 }
 0xb7d   :  { %1955 = vmatmul.mubr.msk.f32.gmra.mrb[26].mxu0 %vm342_vm2, %v2502_v6 }
 0xb7e   :  { %1957 = vmatprep.mubr.msk.f32.mxu0 %vm342_vm2, %v2506_v7 }
 0xb81   :  { %1958 = vmatmul.mubr.msk.f32.gmra.mrb[28].mxu0 %vm342_vm2, %v2518_v11 }
 0xb82   :  { %1960 = vmatprep.mubr.msk.f32.mxu0 %vm342_vm2, %v2522_v12 }
 0xb85   :  { %1961 = vmatmul.mubr.msk.f32.gmra.mrb[30].mxu0 %vm342_vm2, %v2534_v15 }
 0xc4c   :  { %v1953_v0 = vpop.f32.mrb[24].mxu0 }
 0xc4d   :  { %v1482_v2 = vmul.f32 50.0, %v1953_v0  ;;  %1595 = vst.msk [vmem:[%s2805_s10 + $0x8] sm:$0xff] %vm800_vm4, %v1953_v0  ;;  %v1442_v1 = vpop.f32.mrb[25].mxu0 }
 0xc4e   :  { %v1481_v6 = vmul.f32 50.0, %v1442_v1  ;;  %1594 = vst.msk [vmem:[%s2805_s10] sm:$0xff] %vm800_vm4, %v1442_v1 }
 0xc4f   :  { %v1490_v7 = vsel %vm650_vm3, %v1482_v2, -1e+30 }
 0xc50   :  { %v1956_v11 = vpop.f32.mrb[26].mxu0  ;;  %v1500_v12 = vsel %vm800_vm4, %v1490_v7, -inf  ;;  %v1489_v5 = vsel %vm650_vm3, %v1481_v6, -1e+30 }
 0xc51   :  { %v1484_v15 = vmul.f32 50.0, %v1956_v11  ;;  %1597 = vst.msk [vmem:[%s2805_s10 + $0x18] sm:$0xff] %vm800_vm4, %v1956_v11  ;;  %1501 = vmax.xlane.f32.xlu0 %v1500_v12  ;;  %v1452_v3 = vpop.f32.mrb[27].mxu0  ;;  %v1497_v10 = vsel %vm800_vm4, %v1489_v5, -inf }
 0xc52   :  { %1596 = vst.msk [vmem:[%s2805_s10 + $0x10] sm:$0xff] %vm800_vm4, %v1452_v3  ;;  %v1483_v14 = vmul.f32 50.0, %v1452_v3 }
 0xc53   :  { %v1492_v19 = vsel %vm650_vm3, %v1484_v15, -1e+30 }
 0xc54   :  { %v1959_v9 = vpop.f32.mrb[28].mxu0  ;;  %v1506_v21 = vsel %vm800_vm4, %v1492_v19, -inf  ;;  %v1491_v24 = vsel %vm650_vm3, %v1483_v14, -1e+30 }
 0xc55   :  { %1599 = vst.msk [vmem:[%s2805_s10 + $0x28] sm:$0xff] %vm800_vm4, %v1959_v9  ;;  %1498 = vmax.xlane.f32.xlu0 %v1497_v10  ;;  %v1462_v17 = vpop.f32.mrb[29].mxu0  ;;  %v1486_v22 = vmul.f32 50.0, %v1959_v9  ;;  %v1503_v25 = vsel %vm800_vm4, %v1491_v24, -inf }
 0xc56   :  { %1598 = vst.msk [vmem:[%s2805_s10 + $0x20] sm:$0xff] %vm800_vm4, %v1462_v17  ;;  %v1485_v26 = vmul.f32 50.0, %v1462_v17 }
 0xc57   :  { %v1494_v27 = vsel %vm650_vm3, %v1486_v22, -1e+30 }
 0xc58   :  { %v1962_v20 = vpop.f32.mrb[30].mxu0  ;;  %v1512_v28 = vsel %vm800_vm4, %v1494_v27, -inf  ;;  %v1493_v30 = vsel %vm650_vm3, %v1485_v26, -1e+30 }
 0xc59   :  { %1601 = vst.msk [vmem:[%s2805_s10 + $0x38] sm:$0xff] %vm800_vm4, %v1962_v20  ;;  %1507 = vmax.xlane.f32.xlu0 %v1506_v21  ;;  %v1472_v23 = vpop.f32.mrb[31].mxu0  ;;  %v1509_v31 = vsel %vm800_vm4, %v1493_v30, -inf  ;;  %v1488_v32 = vmul.f32 50.0, %v1962_v20 }
 0xc5a   :  { %1600 = vst.msk [vmem:[%s2805_s10 + $0x30] sm:$0xff] %vm800_vm4, %v1472_v23  ;;  %v1487_v29 = vmul.f32 50.0, %v1472_v23  ;;  %s2208_s10 = smov [#allocation5]  }
 0xc5b   :  { %v1496_v35 = vsel %vm650_vm3, %v1488_v32, -1e+30  ;;  %s1608_s25 = sshll.u32 %s2208_s10, 4  ;;  %s1609_s25 = int_to_ptr.vmem [resolvable:$true] %s1608_s25 }
 0xc5c   :  { %v1495_v33 = vsel %vm650_vm3, %v1487_v29, -1e+30  ;;  %v1518_v36 = vsel %vm800_vm4, %v1496_v35, -inf  ;;  %s2176_s26 = scalar_lea.vmem %s1609_s25, 128  ;;  %p2181_p9 = scmp.lt.s32.totalorder %s1609_s25, %s1609_s25 }
 0xc5d   :  { %1504 = vmax.xlane.f32.xlu0 %v1503_v25  ;;  %v1515_v34 = vsel %vm800_vm4, %v1495_v33, -inf  ;;  %p2177_p8 = scmp.ne.s32.totalorder %s1609_s25, %s2176_s26  ;;  %p2182_p10 = scmp.lt.s32.totalorder %s2176_s26, %s2176_s26 }
 0xc5f   :  { %p2183_p11 = por %p2182_p10, %p2181_p9 }
 0xc61   :  { %1513 = vmax.xlane.f32.xlu0 %v1512_v28  ;;  %p2184_p12 = pnand %p2183_p11, %p2177_p8 }
 0xc65   :  { %1510 = vmax.xlane.f32.xlu0 %v1509_v31 }
 0xc69   :  { %1516 = vmax.xlane.f32.xlu0 %v1515_v34 }
 0xc6d   :  { %1519 = vmax.xlane.f32.xlu0 %v1518_v36 }
 0xcde   :  { %v1502_v39 = vpop.xlane.xlu0 %1501 }
 0xcdf   :  { %v1522_v40 = vsub.f32 %v1490_v7, %v1502_v39 }
 0xce1   :  { %v1531_v42 = vmul.f32 1.442695, %v1522_v40 }
 0xce2   :  { %v1499_v37 = vpop.xlane.xlu0 %1498 }
 0xce3   :  { %2122 = vpow2.f32 %v1531_v42  ;;  %v1521_v38 = vsub.f32 %v1489_v5, %v1499_v37 }
 0xce5   :  { %v1529_v43 = vmul.f32 1.442695, %v1521_v38 }
 0xce6   :  { %v1508_v45 = vpop.xlane.xlu0 %1507 }
 0xce7   :  { %2124 = vpow2.f32 %v1529_v43  ;;  %v1524_v46 = vsub.f32 %v1492_v19, %v1508_v45 }
 0xce9   :  { %v1535_v47 = vmul.f32 1.442695, %v1524_v46 }
 0xcea   :  { %v1505_v48 = vpop.xlane.xlu0 %1504 }
 0xceb   :  { %2126 = vpow2.f32 %v1535_v47  ;;  %v1523_v49 = vsub.f32 %v1491_v24, %v1505_v48 }
 0xced   :  { %v2735_v50 = vpop.eup %2122  ;;  %v1533_v18 = vmul.f32 1.442695, %v1523_v49 }
 0xcee   :  { %v1514_v51 = vpop.xlane.xlu0 %1513  ;;  %v1548_v44 = vsel %vm800_vm4, %v2735_v50, 0.0 }
 0xcef   :  { %2128 = vpow2.f32 %v1533_v18  ;;  %v1526_v4 = vsub.f32 %v1494_v27, %v1514_v51  ;;  %1549 = vadd.xlane.f32.xlu0 %v1548_v44 }
 0xcf1   :  { %v2739_v8 = vpop.eup %2124  ;;  %v1539_v13 = vmul.f32 1.442695, %v1526_v4 }
 0xcf2   :  { %v1511_v16 = vpop.xlane.xlu0 %1510  ;;  %v1545_v41 = vsel %vm800_vm4, %v2739_v8, 0.0 }
 0xcf3   :  { %2130 = vpow2.f32 %v1539_v13  ;;  %v1525_v52 = vsub.f32 %v1493_v30, %v1511_v16  ;;  %1546 = vadd.xlane.f32.xlu1 %v1545_v41 }
 0xcf5   :  { %v2127_v53 = vpop.eup %2126  ;;  %v1537_v54 = vmul.f32 1.442695, %v1525_v52 }
 0xcf6   :  { %v1517_v55 = vpop.xlane.xlu0 %1516  ;;  %v1554_v56 = vsel %vm800_vm4, %v2127_v53, 0.0 }
 0xcf7   :  { %2132 = vpow2.f32 %v1537_v54  ;;  %v1527_v57 = vsub.f32 %v1495_v33, %v1517_v55  ;;  %1555 = vadd.xlane.f32.xlu0 %v1554_v56 }
 0xcf9   :  { %v2129_v60 = vpop.eup %2128  ;;  %v1541_v58 = vmul.f32 1.442695, %v1527_v57 }
 0xcfa   :  { %v1520_v59 = vpop.xlane.xlu0 %1519  ;;  %v1551_v61 = vsel %vm800_vm4, %v2129_v60, 0.0 }
 0xcfb   :  { %2134 = vpow2.f32 %v1541_v58  ;;  %v1528_v62 = vsub.f32 %v1496_v35, %v1520_v59  ;;  %1552 = vadd.xlane.f32.xlu0 %v1551_v61 }
 0xcfd   :  { %v2131_v63 = vpop.eup %2130  ;;  %v1543_v0 = vmul.f32 1.442695, %v1528_v62 }
 0xcfe   :  { %v1560_v2 = vsel %vm800_vm4, %v2131_v63, 0.0 }
 0xcff   :  { %2136 = vpow2.f32 %v1543_v0  ;;  %1561 = vadd.xlane.f32.xlu0 %v1560_v2 }
 0xd01   :  { %v2133_v1 = vpop.eup %2132 }
 0xd02   :  { %v1557_v6 = vsel %vm800_vm4, %v2133_v1, 0.0 }
 0xd03   :  { %1558 = vadd.xlane.f32.xlu0 %v1557_v6 }
 0xd05   :  { %v2135_v7 = vpop.eup %2134 }
 0xd06   :  { %v1563_v11 = vsel %vm800_vm4, %v2135_v7, 0.0 }
 0xd07   :  { %1564 = vadd.xlane.f32.xlu0 %v1563_v11 }
 0xd09   :  { %v2137_v12 = vpop.eup %2136 }
 0xd0a   :  { %v1566_v15 = vsel %vm800_vm4, %v2137_v12, 0.0 }
 0xd0b   :  { %1567 = vadd.xlane.f32.xlu0 %v1566_v15 }
 0xd0c   :  { %2187 = shalt.err (!%p2184_p12)
}
 0xd0d   :  { %s2188_s28 = scalar_lea.hbm %s2802_s7, 128 }
 0xd0e   :  { %p2189_p13 = scmp.ne.s32.totalorder %s2802_s7, %s2188_s28  ;;  %p2192_p0 = scmp.lt.u32.totalorder %s2188_s28, %s2802_s7 }
 0xd10   :  { %p2194_p1 = pnand %p2192_p0, %p2189_p13 }
 0xd12   :  { %2197 = shalt.err (!%p2194_p1)
}
 0xd13   :  { %1611 = dma.vmem_to_hbm [thread:$0]  %s1609_s25, 128, %s2802_s7, [#allocation4]  }
 0xd7c   :  { %v1550_v3 = vpop.xlane.xlu0 %1549 }
 0xd7d   :  { %2138 = vrcp.f32 %v1550_v3 }
 0xd80   :  { %v1547_v5 = vpop.xlane.xlu1 %1546 }
 0xd81   :  { %2140 = vrcp.f32 %v1547_v5 }
 0xd84   :  { %v1556_v9 = vpop.xlane.xlu0 %1555 }
 0xd85   :  { %2142 = vrcp.f32 %v1556_v9 }
 0xd87   :  { %v2139_v10 = vpop.eup %2138 }
 0xd88   :  { %v1572_v14 = vmul.f32 %v2139_v10, %v2735_v50  ;;  %v1553_v17 = vpop.xlane.xlu0 %1552 }
 0xd89   :  { %2144 = vrcp.f32 %v1553_v17 }
 0xd8a   :  { %1587 = vst.msk [vmem:[%s2803_s8 + $0x8] sm:$0xff] %vm800_vm4, %v1572_v14 }
 0xd8b   :  { %v2141_v19 = vpop.eup %2140 }
 0xd8c   :  { %v1570_v20 = vmul.f32 %v2141_v19, %v2739_v8  ;;  %v1562_v21 = vpop.xlane.xlu0 %1561 }
 0xd8d   :  { %2146 = vrcp.f32 %v1562_v21 }
 0xd8e   :  { %1586 = vst.msk [vmem:[%s2803_s8] sm:$0xff] %vm800_vm4, %v1570_v20 }
 0xd8f   :  { %v2143_v22 = vpop.eup %2142 }
 0xd90   :  { %v1576_v23 = vmul.f32 %v2143_v22, %v2127_v53  ;;  %v1559_v24 = vpop.xlane.xlu0 %1558 }
 0xd91   :  { %2148 = vrcp.f32 %v1559_v24 }
 0xd92   :  { %1589 = vst.msk [vmem:[%s2803_s8 + $0x18] sm:$0xff] %vm800_vm4, %v1576_v23 }
 0xd93   :  { %v2145_v25 = vpop.eup %2144 }
 0xd94   :  { %v1574_v26 = vmul.f32 %v2145_v25, %v2129_v60  ;;  %v1565_v27 = vpop.xlane.xlu0 %1564 }
 0xd95   :  { %2150 = vrcp.f32 %v1565_v27 }
 0xd96   :  { %1588 = vst.msk [vmem:[%s2803_s8 + $0x10] sm:$0xff] %vm800_vm4, %v1574_v26 }
 0xd97   :  { %v2147_v28 = vpop.eup %2146 }
 0xd98   :  { %v1580_v29 = vmul.f32 %v2147_v28, %v2131_v63  ;;  %v1568_v30 = vpop.xlane.xlu0 %1567 }
 0xd99   :  { %2152 = vrcp.f32 %v1568_v30 }
 0xd9a   :  { %1591 = vst.msk [vmem:[%s2803_s8 + $0x28] sm:$0xff] %vm800_vm4, %v1580_v29 }
 0xd9b   :  { %v2149_v31 = vpop.eup %2148 }
 0xd9c   :  { %v1578_v32 = vmul.f32 %v2149_v31, %v2133_v1 }
 0xd9e   :  { %1590 = vst.msk [vmem:[%s2803_s8 + $0x20] sm:$0xff] %vm800_vm4, %v1578_v32 }
 0xd9f   :  { %v2151_v33 = vpop.eup %2150 }
 0xda0   :  { %v1582_v34 = vmul.f32 %v2151_v33, %v2135_v7 }
 0xda2   :  { %1592 = vst.msk [vmem:[%s2803_s8 + $0x30] sm:$0xff] %vm800_vm4, %v1582_v34 }
 0xda3   :  { %v2153_v35 = vpop.eup %2152 }
 0xda4   :  { %v1584_v36 = vmul.f32 %v2153_v35, %v2137_v12 }
 0xda6   :  { %1593 = vst.msk [vmem:[%s2803_s8 + $0x38] sm:$0xff] %vm800_vm4, %v1584_v36 }
 0xda7   :  { %2200 = dma.done.wait [#allocation4], 128  }
 0xda8   :  { %2201 = vsyncadd [#allocation4], 4294967168 }
 0xda9   :  { %1627 = vsyncpa [#allocation3], 1 }
 0xdaa   :  { %1628 = vsyncpa [#allocation4], 1 }

</bundles_post_ra>
